<compile_context>
chip_gen: v7x
topology: tpu7x:2x2x1
jax: 0.10.0
libtpu: 0.0.40
codegen_flags: <defaults>
</compile_context>

<pallas_src>
from functools import partial

import jax
import jax.numpy as jnp
import numpy as np
from jax.experimental import pallas as pl
from jax.experimental.pallas import tpu as pltpu


def _round_up(n, m):
    return ((n + m - 1) // m) * m


# ----------------------------------------------------------------------------
# Fused Pallas kernel: one (batch, output-row-tile) step of the whole block.
# ----------------------------------------------------------------------------
def _fused_block_kernel(x_ref, w2_ref, wsc_ref, w3_ref, o_ref, *,
                        tile_h, w_out, stride):
    # x_ref block: (1, th_in, W+2, Cin+1)  -- spatially padded, halo'd rows,
    #              last channel is a constant 1 inside the valid image, 0 in pad.
    xw = x_ref[0]                                   # (th_in, W+2, C_aug)
    c_aug = xw.shape[-1]
    cmid = w2_ref.shape[-1]
    m = tile_h * w_out
    row_span = (tile_h - 1) * stride + 1
    col_span = (w_out - 1) * stride + 1

    # conv1 (1x1) folded into conv2 (3x3): 9 taps, accumulated in f32 on MXU.
    acc = jnp.zeros((m, cmid), jnp.float32)
    t = 0
    for dy in range(3):
        for dx in range(3):
            tap = xw[dy:dy + row_span:stride, dx:dx + col_span:stride, :]
            acc = acc + jnp.dot(tap.reshape(m, c_aug), w2_ref[t],
                                preferred_element_type=jnp.float32)
            t += 1

    # conv3 (1x1) with BatchNorm scale folded into the weights.
    y = jnp.dot(acc.astype(w3_ref.dtype), w3_ref[...],
                preferred_element_type=jnp.float32)

    # shortcut 1x1 conv (stride) with BN scale + ALL biases folded in
    # (the combined bias rides on the ones-channel of the augmented input).
    xs = xw[1:1 + row_span:stride, 1:1 + col_span:stride, :]
    y = y + jnp.dot(xs.reshape(m, c_aug), wsc_ref[...],
                    preferred_element_type=jnp.float32)

    o_ref[0] = jnp.maximum(y, 0.0).astype(o_ref.dtype)


# ----------------------------------------------------------------------------
# Wrapper: one-time weight folding + layout plumbing + single pallas_call.
# ----------------------------------------------------------------------------
def basic_block_disout_forward(x_nchw, params, *, stride=1,
                               compute_dtype=jnp.bfloat16,
                               target_tile_rows=1024):
    """Forward of BasicBlock_disout. x_nchw: (B, Cin, H, W) float32, NCHW."""
    planes = params["w3"].shape[1]
    cmid = params["w1"].shape[1]
    f32 = jnp.float32

    x = jnp.transpose(x_nchw, (0, 2, 3, 1)).astype(f32)     # NCHW -> NHWC
    B, H, W, Cin = x.shape
    Ho = (H - 1) // stride + 1
    Wo = (W - 1) // stride + 1
    c_aug = Cin + 1

    # PyTorch quirk: `_, _, _, x_planes = x.size()` on an NCHW tensor reads
    # the spatial width.
    x_planes = x_nchw.shape[3]
    use_shortcut_conv = (stride != 1) or (x_planes != planes)

    # ---- one-time weight folding (wrapper-side, f32) -----------------------
    eps = 1e-5
    scale = params["gamma"] / jnp.sqrt(params["running_var"] + eps)
    shift = params["beta"] - params["running_mean"] * scale

    # conv1 folded into conv2 taps.  The ones-channel carries b1 so that the
    # zero spatial padding of conv2's input stays exact.
    w1_aug = jnp.concatenate([params["w1"], params["b1"][None, :]], axis=0)
    w2 = params["w2"].reshape(9, cmid, cmid)                 # (dy*3+dx, ci, co)
    w2_eff = jnp.einsum("kc,tcm->tkm", w1_aug, w2)           # (9, Cin+1, cmid)

    # BN folded into conv3 / shortcut weights; all remaining biases
    # (b2 @ w3, b3, b_sc, BN shift) folded into the ones-channel row.
    w3_s = params["w3"] * scale[None, :]
    bias_common = params["b2"] @ params["w3"] + params["b3"]
    if use_shortcut_conv:
        w_sc_s = params["w_sc"] * scale[None, :]
        bias_all = (bias_common + params["b_sc"]) * scale + shift
    else:
        if Cin != planes:
            raise ValueError("identity shortcut requires Cin == planes "
                             "(the PyTorch module would also fail here)")
        w_sc_s = jnp.diag(scale)
        bias_all = bias_common * scale + shift
    w_sc_aug = jnp.concatenate([w_sc_s, bias_all[None, :]], axis=0)

    # Lane-dense output: pad output channels to a multiple of 128 so kernel
    # stores are full-lane (unmasked); sliced off after the call.
    n_pad = _round_up(planes, 128)
    if n_pad != planes:
        w3_s = jnp.pad(w3_s, ((0, 0), (0, n_pad - planes)))
        w_sc_aug = jnp.pad(w_sc_aug, ((0, 0), (0, n_pad - planes)))

    w2_eff = w2_eff.astype(compute_dtype)
    w3_s = w3_s.astype(compute_dtype)
    w_sc_aug = w_sc_aug.astype(compute_dtype)

    # ---- activation prep: ones channel, spatial pad, halo'd row windows ----
    x_aug = jnp.concatenate([x, jnp.ones((B, H, W, 1), f32)], axis=-1)
    x_aug = x_aug.astype(compute_dtype)

    tile_h = max(1, min(Ho, target_tile_rows // max(1, Wo)))
    n_tiles = (Ho + tile_h - 1) // tile_h                    # cdiv (tail-safe)
    th_in = (tile_h - 1) * stride + 3
    rows_needed = (n_tiles - 1) * tile_h * stride + th_in
    extra_bottom = max(0, rows_needed - (H + 2))             # tail padding
    xp = jnp.pad(x_aug, ((0, 0), (1, 1 + extra_bottom), (1, 1), (0, 0)))
    Wp2 = W + 2

    wins = [xp[:, t * tile_h * stride: t * tile_h * stride + th_in]
            for t in range(n_tiles)]
    x_win = jnp.stack(wins, axis=1).reshape(B * n_tiles, th_in, Wp2, c_aug)

    m_tile = tile_h * Wo
    kernel = partial(_fused_block_kernel, tile_h=tile_h, w_out=Wo,
                     stride=stride)
    out = pl.pallas_call(
        kernel,
        out_shape=jax.ShapeDtypeStruct((B * n_tiles, m_tile, n_pad), f32),
        grid=(B * n_tiles,),
        in_specs=[
            pl.BlockSpec((1, th_in, Wp2, c_aug), lambda i: (i, 0, 0, 0)),
            pl.BlockSpec((9, c_aug, cmid), lambda i: (0, 0, 0)),   # resident
            pl.BlockSpec((c_aug, n_pad), lambda i: (0, 0)),        # resident
            pl.BlockSpec((cmid, n_pad), lambda i: (0, 0)),         # resident
        ],
        out_specs=pl.BlockSpec((1, m_tile, n_pad), lambda i: (i, 0, 0)),
        compiler_params=pltpu.CompilerParams(
            dimension_semantics=("parallel",)),
    )(x_win, w2_eff, w_sc_aug, w3_s)

    out = out.reshape(B, n_tiles * tile_h, Wo, n_pad)[:, :Ho, :, :planes]
    return jnp.transpose(out, (0, 3, 1, 2))                  # NHWC -> NCHW


# ----------------------------------------------------------------------------
# Pure-JAX reference (XLA convs) for correctness check
# ----------------------------------------------------------------------------
def reference_forward(x_nchw, params, *, stride=1):
    planes = params["w3"].shape[1]
    cmid = params["w1"].shape[1]
    x = jnp.transpose(x_nchw, (0, 2, 3, 1))
    Cin = x.shape[-1]
    dn = ("NHWC", "HWIO", "NHWC")

    def conv(inp, w_hwio, b, s, pad):
        y = jax.lax.conv_general_dilated(inp, w_hwio, (s, s), pad,
                                         dimension_numbers=dn)
        return y + b

    x_planes = x_nchw.shape[3]
    if stride != 1 or x_planes != planes:
        sc = conv(x, params["w_sc"].reshape(1, 1, Cin, planes),
                  params["b_sc"], stride, "VALID")
    else:
        sc = x

    y = conv(x, params["w1"].reshape(1, 1, Cin, cmid), params["b1"], 1, "VALID")
    y = conv(y, params["w2"], params["b2"], stride, [(1, 1), (1, 1)])
    y = conv(y, params["w3"].reshape(1, 1, cmid, planes), params["b3"],
             1, "VALID")
    y = y + sc
    scale = params["gamma"] / jnp.sqrt(params["running_var"] + 1e-5)
    shift = params["beta"] - params["running_mean"] * scale
    y = jnp.maximum(y * scale + shift, 0.0)
    return jnp.transpose(y, (0, 3, 1, 2))


# ----------------------------------------------------------------------------
# Main
# ----------------------------------------------------------------------------
if __name__ == "__main__":
    key = jax.random.PRNGKey(0)
    B, Cin, H, W = 2, 4, 16, 16
    planes = 8          # x.size(3)=16 != 8  -> shortcut conv path is exercised
    stride = 1
    cmid = planes // 2

    ks = jax.random.split(key, 13)
    f32 = jnp.float32
    params = {
        "w_sc": 0.1 * jax.random.normal(ks[0], (Cin, planes), f32),
        "b_sc": 0.05 * jax.random.normal(ks[1], (planes,), f32),
        "w1":   0.1 * jax.random.normal(ks[2], (Cin, cmid), f32),
        "b1":   0.05 * jax.random.normal(ks[3], (cmid,), f32),
        "w2":   0.1 * jax.random.normal(ks[4], (3, 3, cmid, cmid), f32),
        "b2":   0.05 * jax.random.normal(ks[5], (cmid,), f32),
        "w3":   0.1 * jax.random.normal(ks[6], (cmid, planes), f32),
        "b3":   0.05 * jax.random.normal(ks[7], (planes,), f32),
        "gamma": 1.0 + 0.1 * jax.random.normal(ks[8], (planes,), f32),
        "beta":  0.1 * jax.random.normal(ks[9], (planes,), f32),
        "running_mean": 0.1 * jax.random.normal(ks[10], (planes,), f32),
        "running_var":  1.0 + 0.1 * jnp.abs(
            jax.random.normal(ks[11], (planes,), f32)),
    }

    x = jax.random.normal(ks[12], (B, Cin, H, W), f32)
    Ho = (H - 1) // stride + 1
    Wo = (W - 1) // stride + 1

    ref = reference_forward(x, params, stride=stride)

    # bf16 compute path (default, per perf guidance; f32 MXU accumulation).
    out_bf16 = jax.block_until_ready(
        basic_block_disout_forward(x, params, stride=stride,
                                   compute_dtype=jnp.bfloat16))
    assert out_bf16.shape == (B, planes, Ho, Wo)
    np.testing.assert_allclose(np.asarray(out_bf16), np.asarray(ref),
                               rtol=5e-2, atol=5e-2)

    # f32 compute path (tighter correctness check).
    out_f32 = jax.block_until_ready(
        basic_block_disout_forward(x, params, stride=stride,
                                   compute_dtype=jnp.float32))
    assert out_f32.shape == (B, planes, Ho, Wo)
    np.testing.assert_allclose(np.asarray(out_f32), np.asarray(ref),
                               rtol=2e-2, atol=2e-3)

    print("KERNEL_OK")
</pallas_src>

<mosaic_0001>
module attributes {stable_mosaic.version = 11 : i64} {
  func.func @_fused_block_kernel(%arg0: i32, %arg1: memref<1x18x18x5xbf16, #tpu.memory_space<vmem>>, %arg2: memref<9x5x4xbf16, #tpu.memory_space<vmem>>, %arg3: memref<5x128xbf16, #tpu.memory_space<vmem>>, %arg4: memref<4x128xbf16, #tpu.memory_space<vmem>>, %arg5: memref<1x256x128xf32, #tpu.memory_space<vmem>>) attributes {dimension_semantics = [#tpu.dimension_semantics<parallel>], iteration_bounds = array<i64: 2>, scalar_prefetch = 0 : i64, scratch_operands = 0 : i64, tpu.core_type = #tpu.core_type<tc>, window_params = [{transform_indices = @transform_0, window_bounds = array<i64: 1, 18, 18, 5>}, {pipeline_mode = #tpu.pipeline_mode<synchronous>, transform_indices = @transform_1, window_bounds = array<i64: 9, 5, 4>}, {pipeline_mode = #tpu.pipeline_mode<synchronous>, transform_indices = @transform_2, window_bounds = array<i64: 5, 128>}, {pipeline_mode = #tpu.pipeline_mode<synchronous>, transform_indices = @transform_3, window_bounds = array<i64: 4, 128>}, {transform_indices = @transform_4, window_bounds = array<i64: 1, 256, 128>}]} {
    %c0 = arith.constant 0 : index
    %c0_0 = arith.constant 0 : index
    %c0_1 = arith.constant 0 : index
    %c0_2 = arith.constant 0 : index
    %0 = vector.load %arg1[%c0, %c0_0, %c0_1, %c0_2] : memref<1x18x18x5xbf16, #tpu.memory_space<vmem>>, vector<1x18x18x5xbf16>
    %1 = vector.shape_cast %0 : vector<1x18x18x5xbf16> to vector<18x18x5xbf16>
    %cst = arith.constant 0.000000e+00 : f32
    %2 = vector.broadcast %cst : f32 to vector<256x4xf32>
    %3 = vector.extract_strided_slice %1 {offsets = [0, 0, 0], sizes = [16, 16, 5], strides = [1, 1, 1]} : vector<18x18x5xbf16> to vector<16x16x5xbf16>
    %4 = vector.shape_cast %3 : vector<16x16x5xbf16> to vector<256x5xbf16>
    %c0_3 = arith.constant 0 : index
    %c0_4 = arith.constant 0 : index
    %c0_5 = arith.constant 0 : index
    %5 = vector.load %arg2[%c0_3, %c0_4, %c0_5] : memref<9x5x4xbf16, #tpu.memory_space<vmem>>, vector<1x5x4xbf16>
    %6 = vector.shape_cast %5 : vector<1x5x4xbf16> to vector<5x4xbf16>
    %cst_6 = arith.constant dense<0.000000e+00> : vector<256x4xf32>
    %7 = tpu.matmul %4, %6, %cst_6 {dimension_numbers = #tpu.dot_dimension_numbers<[1], [0], [0], [1], [0, 0, 1, 1], [], []>} : vector<256x5xbf16>, vector<5x4xbf16>, vector<256x4xf32> -> vector<256x4xf32>
    %8 = arith.addf %2, %7 : vector<256x4xf32>
    %9 = vector.extract_strided_slice %1 {offsets = [0, 1, 0], sizes = [16, 16, 5], strides = [1, 1, 1]} : vector<18x18x5xbf16> to vector<16x16x5xbf16>
    %10 = vector.shape_cast %9 : vector<16x16x5xbf16> to vector<256x5xbf16>
    %c1 = arith.constant 1 : index
    %c0_7 = arith.constant 0 : index
    %c0_8 = arith.constant 0 : index
    %11 = vector.load %arg2[%c1, %c0_7, %c0_8] : memref<9x5x4xbf16, #tpu.memory_space<vmem>>, vector<1x5x4xbf16>
    %12 = vector.shape_cast %11 : vector<1x5x4xbf16> to vector<5x4xbf16>
    %cst_9 = arith.constant dense<0.000000e+00> : vector<256x4xf32>
    %13 = tpu.matmul %10, %12, %cst_9 {dimension_numbers = #tpu.dot_dimension_numbers<[1], [0], [0], [1], [0, 0, 1, 1], [], []>} : vector<256x5xbf16>, vector<5x4xbf16>, vector<256x4xf32> -> vector<256x4xf32>
    %14 = arith.addf %8, %13 : vector<256x4xf32>
    %15 = vector.extract_strided_slice %1 {offsets = [0, 2, 0], sizes = [16, 16, 5], strides = [1, 1, 1]} : vector<18x18x5xbf16> to vector<16x16x5xbf16>
    %16 = vector.shape_cast %15 : vector<16x16x5xbf16> to vector<256x5xbf16>
    %c2 = arith.constant 2 : index
    %c0_10 = arith.constant 0 : index
    %c0_11 = arith.constant 0 : index
    %17 = vector.load %arg2[%c2, %c0_10, %c0_11] : memref<9x5x4xbf16, #tpu.memory_space<vmem>>, vector<1x5x4xbf16>
    %18 = vector.shape_cast %17 : vector<1x5x4xbf16> to vector<5x4xbf16>
    %cst_12 = arith.constant dense<0.000000e+00> : vector<256x4xf32>
    %19 = tpu.matmul %16, %18, %cst_12 {dimension_numbers = #tpu.dot_dimension_numbers<[1], [0], [0], [1], [0, 0, 1, 1], [], []>} : vector<256x5xbf16>, vector<5x4xbf16>, vector<256x4xf32> -> vector<256x4xf32>
    %20 = arith.addf %14, %19 : vector<256x4xf32>
    %21 = vector.extract_strided_slice %1 {offsets = [1, 0, 0], sizes = [16, 16, 5], strides = [1, 1, 1]} : vector<18x18x5xbf16> to vector<16x16x5xbf16>
    %22 = vector.shape_cast %21 : vector<16x16x5xbf16> to vector<256x5xbf16>
    %c3 = arith.constant 3 : index
    %c0_13 = arith.constant 0 : index
    %c0_14 = arith.constant 0 : index
    %23 = vector.load %arg2[%c3, %c0_13, %c0_14] : memref<9x5x4xbf16, #tpu.memory_space<vmem>>, vector<1x5x4xbf16>
    %24 = vector.shape_cast %23 : vector<1x5x4xbf16> to vector<5x4xbf16>
    %cst_15 = arith.constant dense<0.000000e+00> : vector<256x4xf32>
    %25 = tpu.matmul %22, %24, %cst_15 {dimension_numbers = #tpu.dot_dimension_numbers<[1], [0], [0], [1], [0, 0, 1, 1], [], []>} : vector<256x5xbf16>, vector<5x4xbf16>, vector<256x4xf32> -> vector<256x4xf32>
    %26 = arith.addf %20, %25 : vector<256x4xf32>
    %27 = vector.extract_strided_slice %1 {offsets = [1, 1, 0], sizes = [16, 16, 5], strides = [1, 1, 1]} : vector<18x18x5xbf16> to vector<16x16x5xbf16>
    %28 = vector.shape_cast %27 : vector<16x16x5xbf16> to vector<256x5xbf16>
    %c4 = arith.constant 4 : index
    %c0_16 = arith.constant 0 : index
    %c0_17 = arith.constant 0 : index
    %29 = vector.load %arg2[%c4, %c0_16, %c0_17] : memref<9x5x4xbf16, #tpu.memory_space<vmem>>, vector<1x5x4xbf16>
    %30 = vector.shape_cast %29 : vector<1x5x4xbf16> to vector<5x4xbf16>
    %cst_18 = arith.constant dense<0.000000e+00> : vector<256x4xf32>
    %31 = tpu.matmul %28, %30, %cst_18 {dimension_numbers = #tpu.dot_dimension_numbers<[1], [0], [0], [1], [0, 0, 1, 1], [], []>} : vector<256x5xbf16>, vector<5x4xbf16>, vector<256x4xf32> -> vector<256x4xf32>
    %32 = arith.addf %26, %31 : vector<256x4xf32>
    %33 = vector.extract_strided_slice %1 {offsets = [1, 2, 0], sizes = [16, 16, 5], strides = [1, 1, 1]} : vector<18x18x5xbf16> to vector<16x16x5xbf16>
    %34 = vector.shape_cast %33 : vector<16x16x5xbf16> to vector<256x5xbf16>
    %c5 = arith.constant 5 : index
    %c0_19 = arith.constant 0 : index
    %c0_20 = arith.constant 0 : index
    %35 = vector.load %arg2[%c5, %c0_19, %c0_20] : memref<9x5x4xbf16, #tpu.memory_space<vmem>>, vector<1x5x4xbf16>
    %36 = vector.shape_cast %35 : vector<1x5x4xbf16> to vector<5x4xbf16>
    %cst_21 = arith.constant dense<0.000000e+00> : vector<256x4xf32>
    %37 = tpu.matmul %34, %36, %cst_21 {dimension_numbers = #tpu.dot_dimension_numbers<[1], [0], [0], [1], [0, 0, 1, 1], [], []>} : vector<256x5xbf16>, vector<5x4xbf16>, vector<256x4xf32> -> vector<256x4xf32>
    %38 = arith.addf %32, %37 : vector<256x4xf32>
    %39 = vector.extract_strided_slice %1 {offsets = [2, 0, 0], sizes = [16, 16, 5], strides = [1, 1, 1]} : vector<18x18x5xbf16> to vector<16x16x5xbf16>
    %40 = vector.shape_cast %39 : vector<16x16x5xbf16> to vector<256x5xbf16>
    %c6 = arith.constant 6 : index
    %c0_22 = arith.constant 0 : index
    %c0_23 = arith.constant 0 : index
    %41 = vector.load %arg2[%c6, %c0_22, %c0_23] : memref<9x5x4xbf16, #tpu.memory_space<vmem>>, vector<1x5x4xbf16>
    %42 = vector.shape_cast %41 : vector<1x5x4xbf16> to vector<5x4xbf16>
    %cst_24 = arith.constant dense<0.000000e+00> : vector<256x4xf32>
    %43 = tpu.matmul %40, %42, %cst_24 {dimension_numbers = #tpu.dot_dimension_numbers<[1], [0], [0], [1], [0, 0, 1, 1], [], []>} : vector<256x5xbf16>, vector<5x4xbf16>, vector<256x4xf32> -> vector<256x4xf32>
    %44 = arith.addf %38, %43 : vector<256x4xf32>
    %45 = vector.extract_strided_slice %1 {offsets = [2, 1, 0], sizes = [16, 16, 5], strides = [1, 1, 1]} : vector<18x18x5xbf16> to vector<16x16x5xbf16>
    %46 = vector.shape_cast %45 : vector<16x16x5xbf16> to vector<256x5xbf16>
    %c7 = arith.constant 7 : index
    %c0_25 = arith.constant 0 : index
    %c0_26 = arith.constant 0 : index
    %47 = vector.load %arg2[%c7, %c0_25, %c0_26] : memref<9x5x4xbf16, #tpu.memory_space<vmem>>, vector<1x5x4xbf16>
    %48 = vector.shape_cast %47 : vector<1x5x4xbf16> to vector<5x4xbf16>
    %cst_27 = arith.constant dense<0.000000e+00> : vector<256x4xf32>
    %49 = tpu.matmul %46, %48, %cst_27 {dimension_numbers = #tpu.dot_dimension_numbers<[1], [0], [0], [1], [0, 0, 1, 1], [], []>} : vector<256x5xbf16>, vector<5x4xbf16>, vector<256x4xf32> -> vector<256x4xf32>
    %50 = arith.addf %44, %49 : vector<256x4xf32>
    %51 = vector.extract_strided_slice %1 {offsets = [2, 2, 0], sizes = [16, 16, 5], strides = [1, 1, 1]} : vector<18x18x5xbf16> to vector<16x16x5xbf16>
    %52 = vector.shape_cast %51 : vector<16x16x5xbf16> to vector<256x5xbf16>
    %c8 = arith.constant 8 : index
    %c0_28 = arith.constant 0 : index
    %c0_29 = arith.constant 0 : index
    %53 = vector.load %arg2[%c8, %c0_28, %c0_29] : memref<9x5x4xbf16, #tpu.memory_space<vmem>>, vector<1x5x4xbf16>
    %54 = vector.shape_cast %53 : vector<1x5x4xbf16> to vector<5x4xbf16>
    %cst_30 = arith.constant dense<0.000000e+00> : vector<256x4xf32>
    %55 = tpu.matmul %52, %54, %cst_30 {dimension_numbers = #tpu.dot_dimension_numbers<[1], [0], [0], [1], [0, 0, 1, 1], [], []>} : vector<256x5xbf16>, vector<5x4xbf16>, vector<256x4xf32> -> vector<256x4xf32>
    %56 = arith.addf %50, %55 : vector<256x4xf32>
    %57 = arith.truncf %56 : vector<256x4xf32> to vector<256x4xbf16>
    %c0_31 = arith.constant 0 : index
    %c0_32 = arith.constant 0 : index
    %58 = vector.load %arg4[%c0_31, %c0_32] : memref<4x128xbf16, #tpu.memory_space<vmem>>, vector<4x128xbf16>
    %cst_33 = arith.constant dense<0.000000e+00> : vector<256x128xf32>
    %59 = tpu.matmul %57, %58, %cst_33 {dimension_numbers = #tpu.dot_dimension_numbers<[1], [0], [0], [1], [0, 0, 1, 1], [], []>} : vector<256x4xbf16>, vector<4x128xbf16>, vector<256x128xf32> -> vector<256x128xf32>
    %60 = vector.extract_strided_slice %1 {offsets = [1, 1, 0], sizes = [16, 16, 5], strides = [1, 1, 1]} : vector<18x18x5xbf16> to vector<16x16x5xbf16>
    %61 = vector.shape_cast %60 : vector<16x16x5xbf16> to vector<256x5xbf16>
    %c0_34 = arith.constant 0 : index
    %c0_35 = arith.constant 0 : index
    %62 = vector.load %arg3[%c0_34, %c0_35] : memref<5x128xbf16, #tpu.memory_space<vmem>>, vector<5x128xbf16>
    %cst_36 = arith.constant dense<0.000000e+00> : vector<256x128xf32>
    %63 = tpu.matmul %61, %62, %cst_36 {dimension_numbers = #tpu.dot_dimension_numbers<[1], [0], [0], [1], [0, 0, 1, 1], [], []>} : vector<256x5xbf16>, vector<5x128xbf16>, vector<256x128xf32> -> vector<256x128xf32>
    %64 = arith.addf %59, %63 : vector<256x128xf32>
    %cst_37 = arith.constant 0.000000e+00 : f32
    %65 = vector.broadcast %cst_37 : f32 to vector<256x128xf32>
    %66 = arith.maximumf %64, %65 : vector<256x128xf32>
    %c0_38 = arith.constant 0 : index
    %c0_39 = arith.constant 0 : index
    %c0_40 = arith.constant 0 : index
    %67 = vector.load %arg5[%c0_38, %c0_39, %c0_40] : memref<1x256x128xf32, #tpu.memory_space<vmem>>, vector<1x256x128xf32>
    %68 = vector.shape_cast %67 : vector<1x256x128xf32> to vector<256x128xf32>
    %69 = vector.shape_cast %66 : vector<256x128xf32> to vector<1x256x128xf32>
    tpu.vector_store %arg5[%c0_38, %c0_39, %c0_40], %69 {strides = array<i32>} : memref<1x256x128xf32, #tpu.memory_space<vmem>>, vector<1x256x128xf32>,
    return
  }
  func.func @transform_0(%arg0: i32) -> (i32, i32, i32, i32) {
    %c0_i32 = arith.constant 0 : i32
    %c0_i32_0 = arith.constant 0 : i32
    %c0_i32_1 = arith.constant 0 : i32
    %c0_i32_2 = arith.constant 0 : i32
    return %arg0, %c0_i32, %c0_i32_0, %c0_i32_1 : i32, i32, i32, i32
  }
  func.func @transform_1(%arg0: i32) -> (i32, i32, i32) {
    %c0_i32 = arith.constant 0 : i32
    %c0_i32_0 = arith.constant 0 : i32
    %c0_i32_1 = arith.constant 0 : i32
    %c0_i32_2 = arith.constant 0 : i32
    return %c0_i32, %c0_i32_0, %c0_i32_1 : i32, i32, i32
  }
  func.func @transform_2(%arg0: i32) -> (i32, i32) {
    %c0_i32 = arith.constant 0 : i32
    %c0_i32_0 = arith.constant 0 : i32
    %c0_i32_1 = arith.constant 0 : i32
    return %c0_i32, %c0_i32_0 : i32, i32
  }
  func.func @transform_3(%arg0: i32) -> (i32, i32) {
    %c0_i32 = arith.constant 0 : i32
    %c0_i32_0 = arith.constant 0 : i32
    %c0_i32_1 = arith.constant 0 : i32
    return %c0_i32, %c0_i32_0 : i32, i32
  }
  func.func @transform_4(%arg0: i32) -> (i32, i32, i32) {
    %c0_i32 = arith.constant 0 : i32
    %c0_i32_0 = arith.constant 0 : i32
    %c0_i32_1 = arith.constant 0 : i32
    return %arg0, %c0_i32, %c0_i32_0 : i32, i32, i32
  }
}

</mosaic_0001>

<bundles_post_ra>
// kernel: tpu_custom_call.1
= control target key start
LH: loop header
LB: loop body
LE: loop exit
PB: predicated region body
PF: predicated region fallthrough
CT: control target
= control target key end

     0   :  { %9 = vsyncpa [#allocation3], 0  ;;  %s5957_s0 = inlined_call_operand.vmem [shape: bf16[2,18,18,5], index: 0, kind: input, shape index: {}]   ;;  %s5958_s1 = inlined_call_operand.vmem [shape: bf16[9,5,4], index: 1, kind: input, shape index: {}]   ;;  %s5959_s2 = inlined_call_operand.vmem [shape: bf16[5,128], index: 2, kind: input, shape index: {}]   ;;  %s5960_s3 = inlined_call_operand.vmem [shape: bf16[4,128], index: 3, kind: input, shape index: {}]   ;;  %s5961_s4 = inlined_call_operand.hbm [shape: f32[2,256,128], index: 4, kind: output, shape index: {}]  }
   0x1   :  { %11 = vsyncpa [#allocation3 + $0x1], 0  ;;  %s4727_s15 = smov 0   ;;  %s4729_s16 = smov 0  }
   0x2   :  { %s4731_s17 = smov 0   ;;  %s4733_s18 = smov 0  }
   0x3 LB: > { %s4748_s19 = sadd.s32 4294967295, %s4696_s18   ;;  %s3450_s20 = sadd.s32 4294967294, %s4696_s18   ;;  %s4696_s18 = sphi %s4733_s18, %s6114_s18   ;;  %s4692_s17 = sphi %s4731_s17, %s6113_s17   ;;  %s4688_s16 = sphi %s4729_s16, %s6112_s16   ;;  %s4684_s15 = sphi %s4727_s15, %s6111_s15  }
   0x4   : > { %s4752_s21 = sadd.s32 1, %s4696_s18   ;;  %s113_s22 = sadd.s32 1, %s4692_s17 }
   0x5   : > { %s110_s23 = ssub.s32 %s4696_s18, %s4752_s21  ;;  %p123_p0 = scmp.ne.s32.totalorder %s4692_s17, %s4688_s16 }
   0x6   : > { %p111_p1 = scmp.eq.s32.totalorder %s110_s23, 0  ;;  %p124_p2 = scmp.eq.s32.totalorder %s4748_s19, 1 }
   0x7   : > { %p129_p3 = scmp.ne.s32.totalorder %s4688_s16, %s4684_s15  ;;  %p130_p4 = scmp.eq.s32.totalorder %s3450_s20, 1 }
   0x8   : > { %s4763_s24 = scalar_select %p111_p1, %s4692_s17, %s113_s22  }
   0x9   : > { %p4765_p5 = por %p124_p2, %p123_p0  ;;  %p4769_p6 = por %p130_p4, %p129_p3 }
   0xa   : > { %p3453_p7 = scmp.ge.s32.totalorder %s4696_s18, 1  ;;  %p165_p8 = scmp.lt.s32.totalorder %s4696_s18, 3 }
   0xc   : > { %p166_p9 = pnand %p3453_p7, %p165_p8 }
   0xe   : > { %169 = sbr.rel (%p166_p9) target bundleno = 829 (0x33d), region = 36 }
  0x15   : > { %vm738_vm0 = vcmask 1041408   ;;  %vm739_vm1 = vcmask 1042432   ;;  %v3570_v0 = vld [vmem:[%s5958_s1 + $0xc] sm:$0x7]  ;;  %v4698_v1 = vmov 65535   ;;  %p191_p10 = scmp.lt.s32.totalorder %s4748_s19, 1 }
  0x16   : > { %v740_v2 = vsel %vm738_vm0, 4294967295, %v4698_v1  ;;  %v3588_v3 = vld [vmem:[%s5958_s1 + $0x10] sm:$0x7]  ;;  %v3456_v5 = vld [vmem:[%s5958_s1 + $0x4] sm:$0x7]  ;;  %vm689_vm2 = vcmask 39936  }
  0x17   : > { %v4784_v4 = vsel %vm739_vm1, %v740_v2, 0  ;;  %s192_s7 = scalar_select %p191_p10, %s4748_s19, 1  ;;  %v251_v9 = vld [vmem:[%s5958_s1] sm:$0x7]  ;;  %v3607_v10 = vld [vmem:[%s5958_s1 + $0x14] sm:$0x7] }
  0x18   : > { %6027 = vst [vmem:[#allocation5_spill] sm:$0xff] %v4784_v4  ;;  %v4790_v6 = vand.u32 %v3570_v0, %v4784_v4  ;;  %v1862_v7 = vand.u32 %v3588_v3, %v4784_v4  ;;  %v743_v8 = vand.u32 %v3456_v5, %v4784_v4  ;;  %v4803_v11 = vand.u32 %v4784_v4, %v251_v9  ;;  %v3625_v26 = vld [vmem:[%s5958_s1 + $0x18] sm:$0x7]  ;;  %v2931_v59 = vld [vmem:[%s5960_s3] sm:$0x3]  ;;  %s188_s11 = sand.u32 1, %s4688_s16  }
  0x19   : > { %s4570_s10 = smul.u32 216, %s192_s7  ;;  %vm252_vm3 = vsmask.f32 3328  ;;  %vm253_vm4 = vsmask.f32 7440  ;;  %v4822_v15 = vand.u32 %v3607_v10, %v4784_v4  ;;  %v4888_v51 = vand.u32 %v3625_v26, %v4784_v4  ;;  %s3454_s12 = sshll.u32 %s188_s11, 8 }
  0x1a   : > { %6028 = vst [vmem:[#allocation6_spill] sm:$0xff] %v4790_v6  ;;  %4007 = vmatprep.subr.bf16.mxu0 %v4790_v6  ;;  %3905 = vmatprep.subr.bf16.mxu1 %v743_v8  ;;  %vm4905_vm5 = vmor %vm252_vm3, %vm253_vm4  ;;  %vm1215_vm6 = vcmask 1046532   ;;  %vm3097_vm8 = vcmask 31744   ;;  %s5871_s13 = scalar_lea.vmem [#allocation2], %s3454_s12  ;;  %s3717_s14 = sshll.u32 %s4748_s19, 12 }
  0x1b   : > { %4008 = vmatpush3.bf16.msra.mxu0 %v4790_v6  ;;  %3906 = vmatpush3.bf16.msra.mxu1 %v743_v8  ;;  %s4809_s20 = scalar_lea.vmem %s5957_s0, %s4570_s10  ;;  %6030 = vst [vmem:[#allocation8_spill] sm:$0xff] %v4888_v51  ;;  %vm5283_vm7 = vmor %vm739_vm1, %vm1215_vm6  ;;  %s5907_s27 = scalar_lea.hbm %s5961_s4, %s3717_s14 }
  0x1c   : > { %4041 = vmatprep.subr.bf16.mxu0 %v1862_v7  ;;  %3939 = vmatprep.subr.bf16.mxu1 %v4803_v11  ;;  %v4813_v12 = vld [vmem:[%s4809_s20 + $0xc] sm:$0xf]  ;;  %v4816_v13 = vld [vmem:[%s4809_s20 + $0x10] sm:$0xf]  ;;  %v4819_v14 = vld [vmem:[%s4809_s20 + $0x18] sm:$0xf] }
  0x1d   : > { %v280_v16 = vshrl.u32 %v4813_v12, 16  ;;  %v283_v17 = vshll.u32 %v4813_v12, 16  ;;  %v289_v18 = vshll.u32 %v4816_v13, 16  ;;  %v293_v19 = vshrl.u32 %v4816_v13, 16  ;;  %v4829_v20 = vld [vmem:[%s4809_s20 + $0x1c] sm:$0xf] }
  0x1e   : > { %v4833_v21 = vcombine.low %v4813_v12, %v4816_v13  ;;  %v5963_v23 = vrot.slane %v4816_v13, 5  ;;  %v304_v24 = vshrl.u32 %v4819_v14, 16  ;;  %v4839_v25 = vld [vmem:[%s4809_s20 + $0x24] sm:$0xf]  ;;  %v4847_v31 = vld [vmem:[%s4809_s20 + $0x28] sm:$0xf]  ;;  %v4859_v35 = vcombine.low %v4819_v14, %v4829_v20 }
  0x1f   : > { %v282_v27 = vrot.slane %v280_v16, 4  ;;  %v285_v28 = vrot.slane %v283_v17, 5  ;;  %v4844_v29 = vrot.slane %v289_v18, 5  ;;  %v295_v30 = vrot.slane %v293_v19, 4  ;;  %v4862_v36 = vld [vmem:[%s4809_s20] sm:$0xf] }
  0x20   : > { %v4851_v32 = vrot.slane %v5963_v23, 4  ;;  %4009 = vmatprep.mubr.msk.bf16.mxu0 %vm689_vm2, %v4833_v21  ;;  %v307_v33 = vshll.u32 %v4819_v14, 16  ;;  %v317_v34 = vshrl.u32 %v4829_v20, 16  ;;  %v5962_v40 = vrot.slane %v4829_v20, 5  ;;  %v4868_v41 = vld [vmem:[%s4809_s20 + $0x4] sm:$0xf] }
  0x21   : > { %v286_v37 = vor.u32 %v285_v28, %v282_v27  ;;  %v296_v38 = vor.u32 %v295_v30, %v4844_v29  ;;  %v199_v42 = vld [vmem:[%s4809_s20 + $0x8] sm:$0x1]  ;;  %4010 = vmatmul.mubr.msk.bf16.vlgmr.msra.gmra.mrb[0].mxu0 %vm689_vm2, %v4859_v35  ;;  %v328_v43 = vshrl.u32 %v4839_v25, 16  ;;  %v331_v44 = vshll.u32 %v4839_v25, 16  ;;  %v4882_v49 = vld [vmem:[%s4809_s20 + $0x30] sm:$0xf] }
  0x22   : > { %v341_v45 = vshrl.u32 %v4847_v31, 16  ;;  %v4878_v46 = vcombine.low %v4839_v25, %v4847_v31  ;;  %4042 = vmatpush3.bf16.msra.mxu0 %v1862_v7  ;;  %v256_v48 = vshrl.u32 %v4862_v36, 16  ;;  %v4885_v50 = vld [vmem:[%s4809_s20 + $0x34] sm:$0xf]  ;;  %v259_v52 = vshll.u32 %v4862_v36, 16  ;;  %s5916_s19 = scalar_lea.sflag [#allocation3], %s188_s11 }
  0x23   : > { %v287_v47 = vrot.slane %v286_v37, 4  ;;  %v265_v53 = vshll.u32 %v4868_v41, 16  ;;  %v269_v54 = vshrl.u32 %v4868_v41, 16  ;;  %v275_v55 = vshll.u32 %v199_v42, 16  ;;  %v4896_v56 = vld [vmem:[%s4809_s20 + $0x14] sm:$0x1]  ;;  %4075 = vmatprep.subr.bf16.mxu0 %v4822_v15 }
  0x24   : > { %6029 = vst [vmem:[#allocation7_spill] sm:$0xff] %v4878_v46  ;;  %4013 = vmatprep.mubr.msk.bf16.mxu0 %vm689_vm2, %v4878_v46  ;;  %v297_v57 = vrot.slane %v296_v38, 4  ;;  %v4901_v58 = vrot.slane %v5962_v40, 4  ;;  %v258_v60 = vrot.slane %v256_v48, 4  ;;  %v352_v61 = vshrl.u32 %v4882_v49, 16  ;;  %s4699_s29 = smov [#allocation2]  }
  0x25   : > { %v4911_v62 = vld [vmem:[%s4809_s20 + $0x3c] sm:$0xf]  ;;  %v261_v63 = vrot.slane %v259_v52, 5  ;;  %v267_v0 = vrot.slane %v265_v53, 5  ;;  %v271_v1 = vrot.slane %v269_v54, 4  ;;  %v355_v2 = vshll.u32 %v4882_v49, 16 }
  0x26   : > { %v4915_v3 = vld [vmem:[%s4809_s20 + $0x40] sm:$0xf]  ;;  %v277_v5 = vrot.slane %v275_v55, 5  ;;  %v365_v7 = vshrl.u32 %v4885_v50, 16  ;;  %v4920_v8 = vcombine.low %v4882_v49, %v4885_v50  ;;  %v299_v9 = vshll.u32 %v4896_v56, 16  ;;  %s4638_s30 = sshll.u32 %s4699_s29, 4  ;;  %s4639_s30 = int_to_ptr.vmem [resolvable:$false] %s4638_s30 }
  0x27   : > { %v262_v10 = vor.u32 %v261_v63, %v258_v60  ;;  %v272_v16 = vor.u32 %v271_v1, %v267_v0  ;;  %v292_v17 = vsel %vm4905_vm5, %v287_v47, %v4844_v29  ;;  %v376_v18 = vshrl.u32 %v4911_v62, 16  ;;  %v4928_v19 = vld [vmem:[%s4809_s20 + $0x20] sm:$0x1]  ;;  %v4939_v47 = vld [vmem:[%s4809_s20 + $0x48] sm:$0xf]  ;;  %s4640_s5 = scalar_lea.vmem %s4639_s30, 8192 }
  0x28   : > { %6033 = vst [vmem:[#allocation9_spill] sm:$0xff] %v4920_v8  ;;  %v301_v26 = vrot.slane %v299_v9, 5  ;;  %v379_v27 = vshll.u32 %v4911_v62, 16  ;;  %v4933_v28 = vcombine.low %v4911_v62, %v4915_v3  ;;  %v306_v30 = vrot.slane %v304_v24, 4  ;;  %6035 = vst [vmem:[#allocation11_spill] sm:$0xff] %v4939_v47 }
  0x29   : > { %v263_v37 = vrot.slane %v262_v10, 4  ;;  %v273_v38 = vrot.slane %v272_v16, 4  ;;  %4014 = vmatmul.mubr.msk.bf16.gmra.mrb[4].mxu0 %vm689_vm2, %v4920_v8  ;;  %v309_v29 = vrot.slane %v307_v33, 5  ;;  %v313_v42 = vshll.u32 %v4829_v20, 16  ;;  %v4948_v54 = vld [vmem:[%s4809_s20 + $0x4c] sm:$0xf] }
  0x2a   : > { %6034 = vst [vmem:[#allocation10_spill] sm:$0xff] %v4933_v28  ;;  %v302_v48 = vsel %vm4905_vm5, %v297_v57, %v301_v26  ;;  %v389_v52 = vshrl.u32 %v4915_v3, 16  ;;  %4017 = vmatprep.mubr.msk.bf16.mxu0 %vm689_vm2, %v4933_v28  ;;  %v319_v24 = vrot.slane %v317_v34, 4  ;;  %v323_v53 = vshll.u32 %v4928_v19, 16  ;;  %6036 = vst [vmem:[#allocation12_spill] sm:$0xff] %v4948_v54 }
  0x2b   : > { %v268_v33 = vsel %vm4905_vm5, %v263_v37, %v267_v0  ;;  %v278_v55 = vsel %vm4905_vm5, %v273_v38, %v277_v5  ;;  %v4954_v60 = vcombine.low %v292_v17, %v302_v48  ;;  %v310_v63 = vor.u32 %v309_v29, %v306_v30  ;;  %v4957_v57 = vld [vmem:[%s4809_s20 + $0x2c] sm:$0x1]  ;;  %v4961_v16 = vld [vmem:[%s4809_s20 + $0x54] sm:$0xf]  ;;  %v4976_v29 = vld [vmem:[%s4809_s20 + $0x58] sm:$0xf] }
  0x2c   : > { %v3457_v1 = vcombine.low %v268_v33, %v278_v55  ;;  %v315_v9 = vrot.slane %v313_v42, 5  ;;  %v325_v10 = vrot.slane %v323_v53, 5  ;;  %v400_v34 = vshrl.u32 %v4939_v47, 16  ;;  %v5180_v4 = vld [vmem:[%s4809_s20 + $0x98] sm:$0x1] }
  0x2d   : > { %6037 = vst [vmem:[#allocation13_spill] sm:$0xff] %v4954_v60  ;;  %v311_v26 = vrot.slane %v310_v63, 4  ;;  %v403_v39 = vshll.u32 %v4939_v47, 16  ;;  %v4967_v5 = vcombine.low %v4939_v47, %v4948_v54  ;;  %v330_v30 = vrot.slane %v328_v43, 4  ;;  %v4988_v63 = vld [vmem:[%s4809_s20 + $0x38] sm:$0x1] }
  0x2e   : > { %3907 = vmatprep.mubr.msk.bf16.mxu1 %vm689_vm2, %v3457_v1  ;;  %v320_v17 = vor.u32 %v319_v24, %v315_v9  ;;  %v333_v37 = vrot.slane %v331_v44, 5  ;;  %v337_v38 = vshll.u32 %v4847_v31, 16  ;;  %v343_v48 = vrot.slane %v341_v45, 4  ;;  %v5026_v45 = vld [vmem:[%s4809_s20 + $0x44] sm:$0x1]  ;;  %6057 = vst [vmem:[#allocation29_spill] sm:$0xff] %v5180_v4 }
  0x2f   : > { %6038 = vst [vmem:[#allocation14_spill] sm:$0xff] %v4967_v5  ;;  %3908 = vmatmul.mubr.msk.bf16.vlgmr.msra.gmra.mrb[0].mxu1 %vm689_vm2, %v4954_v60  ;;  %v316_v42 = vsel %vm4905_vm5, %v311_v26, %v315_v9  ;;  %v347_v24 = vshll.u32 %v4957_v57, 16  ;;  %v4996_v9 = vcombine.low %v4961_v16, %v4976_v29  ;;  %v354_v26 = vrot.slane %v352_v61, 4  ;;  %v5042_v43 = vld [vmem:[%s4809_s20 + $0x50] sm:$0x1] }
  0x30   : > { %v321_v53 = vrot.slane %v320_v17, 4  ;;  %v334_v44 = vor.u32 %v333_v37, %v330_v30  ;;  %v339_v33 = vrot.slane %v337_v38, 5  ;;  %3940 = vmatpush3.bf16.msra.mxu1 %v4803_v11  ;;  %v357_v11 = vrot.slane %v355_v2, 5  ;;  %v5005_v38 = vld [vmem:[%s4809_s20 + $0x60] sm:$0xf]  ;;  %6043 = vst [vmem:[#allocation19_spill] sm:$0xff] %v5042_v43 }
  0x31   : > { %4018 = vmatmul.mubr.msk.bf16.gmra.mrb[8].mxu0 %vm689_vm2, %v4967_v5  ;;  %v349_v1 = vrot.slane %v347_v24, 5  ;;  %6039 = vst [vmem:[#allocation15_spill] sm:$0xff] %v4996_v9  ;;  %v361_v40 = vshll.u32 %v4885_v50, 16  ;;  %v367_v61 = vrot.slane %v365_v7, 4  ;;  %v451_v23 = vshll.u32 %v5005_v38, 16 }
  0x32   : > { %v326_v17 = vsel %vm4905_vm5, %v321_v53, %v325_v10  ;;  %v335_v30 = vrot.slane %v334_v44, 4  ;;  %v344_v37 = vor.u32 %v343_v48, %v339_v33  ;;  %4021 = vmatprep.mubr.msk.bf16.mxu0 %vm689_vm2, %v4996_v9  ;;  %v371_v10 = vshll.u32 %v4988_v63, 16  ;;  %v5016_v53 = vld [vmem:[%s4809_s20 + $0x64] sm:$0xf] }
  0x33   : > { %v5007_v24 = vcombine.low %v316_v42, %v326_v17  ;;  %v358_v44 = vor.u32 %v357_v11, %v354_v26  ;;  %v448_v42 = vshrl.u32 %v5005_v38, 16  ;;  %v363_v17 = vrot.slane %v361_v40, 5 }
  0x34   : > { %v340_v2 = vsel %vm4905_vm5, %v335_v30, %v339_v33  ;;  %v345_v48 = vrot.slane %v344_v37, 4  ;;  %v373_v22 = vrot.slane %v371_v10, 5  ;;  %v461_v7 = vshrl.u32 %v5016_v53, 16 }
  0x35   : > { %6040 = vst [vmem:[#allocation16_spill] sm:$0xff] %v5007_v24  ;;  %3911 = vmatprep.mubr.msk.bf16.mxu1 %vm689_vm2, %v5007_v24  ;;  %v359_v33 = vrot.slane %v358_v44, 4  ;;  %v5032_v26 = vcombine.low %v5005_v38, %v5016_v53  ;;  %v378_v30 = vrot.slane %v376_v18, 4  ;;  %v368_v40 = vor.u32 %v367_v61, %v363_v17 }
  0x36   : > { %v350_v55 = vsel %vm4905_vm5, %v345_v48, %v349_v1  ;;  %v381_v11 = vrot.slane %v379_v27, 5  ;;  %v385_v10 = vshll.u32 %v4915_v3, 16  ;;  %v391_v48 = vrot.slane %v389_v52, 4 }
  0x37   : > { %6041 = vst [vmem:[#allocation17_spill] sm:$0xff] %v5032_v26  ;;  %v5036_v37 = vcombine.low %v340_v2, %v350_v55  ;;  %v364_v1 = vsel %vm4905_vm5, %v359_v33, %v363_v17  ;;  %v395_v44 = vshll.u32 %v5026_v45, 16  ;;  %v402_v0 = vrot.slane %v400_v34, 4 }
  0x38   : > { %v369_v18 = vrot.slane %v368_v40, 4  ;;  %v382_v27 = vor.u32 %v381_v11, %v378_v30  ;;  %v387_v55 = vrot.slane %v385_v10, 5  ;;  %v405_v61 = vrot.slane %v403_v39, 5  ;;  %v5064_v10 = vld [vmem:[%s4809_s20 + $0x5c] sm:$0x1] }
  0x39   : > { %6042 = vst [vmem:[#allocation18_spill] sm:$0xff] %v5036_v37  ;;  %3912 = vmatmul.mubr.msk.bf16.gmra.mrb[4].mxu1 %vm689_vm2, %v5036_v37  ;;  %4022 = vmatmul.mubr.msk.bf16.gmra.mrb[12].mxu0 %vm689_vm2, %v5032_v26  ;;  %v397_v2 = vrot.slane %v395_v44, 5  ;;  %v409_v52 = vshll.u32 %v4948_v54, 16  ;;  %v6044_v34 = vshrl.u32 %v4948_v54, 16  ;;  %v419_v33 = vshll.u32 %v5042_v43, 16 }
  0x3a   : > { %4043 = vmatprep.mubr.msk.bf16.mxu0 %vm689_vm2, %v4954_v60  ;;  %v374_v40 = vsel %vm4905_vm5, %v369_v18, %v373_v22  ;;  %v383_v26 = vrot.slane %v382_v27, 4  ;;  %v392_v30 = vor.u32 %v391_v48, %v387_v55  ;;  %v406_v11 = vor.u32 %v405_v61, %v402_v0 }
  0x3b   : > { %v415_v17 = vrot.slane %v6044_v34, 4  ;;  %v5066_v39 = vcombine.low %v364_v1, %v374_v40  ;;  %v411_v44 = vrot.slane %v409_v52, 5  ;;  %v421_v60 = vrot.slane %v419_v33, 5  ;;  %v5085_v52 = vld [vmem:[%s4809_s20 + $0x68] sm:$0x1] }
  0x3c   : > { %v6046_v9 = vshrl.u32 %v4961_v16, 16  ;;  %v388_v34 = vsel %vm4905_vm5, %v383_v26, %v387_v55  ;;  %v393_v43 = vrot.slane %v392_v30, 4  ;;  %v407_v28 = vrot.slane %v406_v11, 4  ;;  %v5088_v40 = vld [vmem:[%s4809_s20 + $0x6c] sm:$0xf] }
  0x3d   : > { %6045 = vst [vmem:[#allocation20_spill] sm:$0xff] %v5066_v39  ;;  %v6047_v22 = vshll.u32 %v4961_v16, 16  ;;  %3915 = vmatprep.mubr.msk.bf16.mxu1 %vm689_vm2, %v5066_v39  ;;  %v416_v0 = vor.u32 %v415_v17, %v411_v44  ;;  %v433_v1 = vshll.u32 %v4976_v29, 16  ;;  %v6048_v18 = vshrl.u32 %v4976_v29, 16 }
  0x3e   : > { %v426_v5 = vrot.slane %v6046_v9, 4  ;;  %v443_v61 = vshll.u32 %v5064_v10, 16  ;;  %v398_v9 = vsel %vm4905_vm5, %v393_v43, %v397_v2  ;;  %v412_v26 = vsel %vm4905_vm5, %v407_v28, %v411_v44 }
  0x3f   : > { %v429_v48 = vrot.slane %v6047_v22, 5  ;;  %v439_v27 = vrot.slane %v6048_v18, 4  ;;  %v450_v33 = vrot.slane %v448_v42, 4  ;;  %v5090_v17 = vcombine.low %v388_v34, %v398_v9  ;;  %v5102_v34 = vld [vmem:[%s4809_s20 + $0x70] sm:$0xf] }
  0x40   : > { %v417_v30 = vrot.slane %v416_v0, 4  ;;  %v435_v11 = vrot.slane %v433_v1, 5  ;;  %v445_v22 = vrot.slane %v443_v61, 5  ;;  %v453_v43 = vrot.slane %v451_v23, 5 }
  0x41   : > { %v430_v55 = vor.u32 %v429_v48, %v426_v5  ;;  %6049 = vst [vmem:[#allocation21_spill] sm:$0xff] %v5090_v17  ;;  %4044 = vmatmul.mubr.msk.bf16.vlgmr.msra.gmra.mrb[0].mxu0 %vm689_vm2, %v5007_v24  ;;  %v457_v28 = vshll.u32 %v5016_v53, 16  ;;  %v463_v5 = vrot.slane %v461_v7, 4  ;;  %3916 = vmatmul.mubr.msk.bf16.gmra.mrb[8].mxu1 %vm689_vm2, %v5090_v17  ;;  %v467_v44 = vshll.u32 %v5085_v52, 16 }
  0x42   : > { %v422_v42 = vsel %vm4905_vm5, %v417_v30, %v421_v60  ;;  %4076 = vmatpush3.bf16.msra.mxu0 %v4822_v15  ;;  %v440_v2 = vor.u32 %v439_v27, %v435_v11  ;;  %v472_v48 = vshrl.u32 %v5088_v40, 16  ;;  %4047 = vmatprep.mubr.msk.bf16.mxu0 %vm689_vm2, %v5036_v37  ;;  %v454_v0 = vor.u32 %v453_v43, %v450_v33  ;;  %v5112_v60 = vld [vmem:[%s4809_s20 + $0x74] sm:$0x1]  ;;  %v5115_v15 = vld [vmem:[%s4809_s20 + $0x78] sm:$0xf] }
  0x43   : > { %v431_v18 = vrot.slane %v430_v55, 4  ;;  %v5105_v23 = vcombine.low %v412_v26, %v422_v42  ;;  %v459_v1 = vrot.slane %v457_v28, 5  ;;  %6051 = vst [vmem:[#allocation23_spill] sm:$0xff] %v5112_v60  ;;  %4109 = vmatprep.subr.bf16.mxu0 %v4888_v51  ;;  %v469_v61 = vrot.slane %v467_v44, 5  ;;  %v5127_v42 = vld [vmem:[%s4809_s20 + $0x7c] sm:$0xf] }
  0x44   : > { %v441_v27 = vrot.slane %v440_v2, 4  ;;  %v474_v9 = vrot.slane %v472_v48, 4  ;;  %v475_v26 = vshll.u32 %v5088_v40, 16  ;;  %v455_v55 = vrot.slane %v454_v0, 4  ;;  %v5135_v37 = vld [vmem:[%s4809_s20 + $0x80] sm:$0x1] }
  0x45   : > { %6050 = vst [vmem:[#allocation22_spill] sm:$0xff] %v5105_v23  ;;  %v436_v7 = vsel %vm4905_vm5, %v431_v18, %v435_v11  ;;  %3919 = vmatprep.mubr.msk.bf16.mxu1 %vm689_vm2, %v5105_v23  ;;  %v464_v30 = vor.u32 %v463_v5, %v459_v1  ;;  %v481_v33 = vshll.u32 %v5102_v34, 16  ;;  %v485_v11 = vshrl.u32 %v5102_v34, 16  ;;  %6053 = vst [vmem:[#allocation25_spill] sm:$0xff] %v5135_v37 }
  0x46   : > { %v446_v18 = vsel %vm4905_vm5, %v441_v27, %v445_v22  ;;  %v477_v43 = vrot.slane %v475_v26, 5  ;;  %v491_v28 = vshll.u32 %v5112_v60, 16  ;;  %v496_v2 = vshrl.u32 %v5115_v15, 16  ;;  %v5138_v26 = vld [vmem:[%s4809_s20 + $0x84] sm:$0xf] }
  0x47   : > { %v5130_v44 = vcombine.low %v436_v7, %v446_v18  ;;  %v460_v5 = vsel %vm4905_vm5, %v455_v55, %v459_v1  ;;  %v465_v48 = vrot.slane %v464_v30, 4  ;;  %v483_v0 = vrot.slane %v481_v33, 5 }
  0x48   : > { %v478_v24 = vor.u32 %v477_v43, %v474_v9  ;;  %v487_v51 = vrot.slane %v485_v11, 4  ;;  %v493_v22 = vrot.slane %v491_v28, 5  ;;  %v498_v27 = vrot.slane %v496_v2, 4  ;;  %v5155_v11 = vld [vmem:[%s4809_s20 + $0x88] sm:$0xf] }
  0x49   : > { %6052 = vst [vmem:[#allocation24_spill] sm:$0xff] %v5130_v44  ;;  %v470_v54 = vsel %vm4905_vm5, %v465_v48, %v469_v61  ;;  %4048 = vmatmul.mubr.msk.bf16.gmra.mrb[4].mxu0 %vm689_vm2, %v5066_v39  ;;  %v499_v7 = vshll.u32 %v5115_v15, 16  ;;  %v505_v1 = vshll.u32 %v5127_v42, 16  ;;  %v509_v55 = vshrl.u32 %v5127_v42, 16  ;;  %3920 = vmatmul.mubr.msk.bf16.gmra.mrb[12].mxu1 %vm689_vm2, %v5130_v44  ;;  %v5158_v2 = vld [vmem:[%s4809_s20 + $0x8c] sm:$0x1] }
  0x4a   : > { %v5149_v9 = vcombine.low %v460_v5, %v470_v54  ;;  %v479_v30 = vrot.slane %v478_v24, 4  ;;  %v488_v33 = vor.u32 %v487_v51, %v483_v0  ;;  %4051 = vmatprep.mubr.msk.bf16.mxu0 %vm689_vm2, %v5090_v17  ;;  %v515_v61 = vshll.u32 %v5135_v37, 16  ;;  %6055 = vst [vmem:[#allocation27_spill] sm:$0xff] %v5158_v2 }
  0x4b   : > { %v501_v18 = vrot.slane %v499_v7, 5  ;;  %v507_v43 = vrot.slane %v505_v1, 5  ;;  %v511_v28 = vrot.slane %v509_v55, 4  ;;  %v520_v48 = vshrl.u32 %v5138_v26, 16  ;;  %v5168_v55 = vld [vmem:[%s4809_s20 + $0x90] sm:$0xf] }
  0x4c   : > { %6054 = vst [vmem:[#allocation26_spill] sm:$0xff] %v5149_v9  ;;  %3923 = vmatprep.mubr.msk.bf16.mxu1 %vm689_vm2, %v5149_v9  ;;  %v484_v51 = vsel %vm4905_vm5, %v479_v30, %v483_v0  ;;  %v489_v54 = vrot.slane %v488_v33, 4  ;;  %v517_v24 = vrot.slane %v515_v61, 5  ;;  %v523_v5 = vshll.u32 %v5138_v26, 16  ;;  %v5175_v30 = vld [vmem:[%s4809_s20 + $0x94] sm:$0xf] }
  0x4d   : > { %v502_v17 = vor.u32 %v501_v18, %v498_v27  ;;  %v512_v39 = vor.u32 %v511_v28, %v507_v43  ;;  %v522_v7 = vrot.slane %v520_v48, 4  ;;  %v529_v1 = vshll.u32 %v5155_v11, 16 }
  0x4e   : > { %v494_v6 = vsel %vm4905_vm5, %v489_v54, %v493_v22  ;;  %v525_v8 = vrot.slane %v523_v5, 5  ;;  %v533_v47 = vshrl.u32 %v5155_v11, 16  ;;  %v539_v0 = vshll.u32 %v5158_v2, 16 }
  0x4f   : > { %v5177_v33 = vcombine.low %v484_v51, %v494_v6  ;;  %v503_v27 = vrot.slane %v502_v17, 4  ;;  %v513_v61 = vrot.slane %v512_v39, 4  ;;  %v531_v18 = vrot.slane %v529_v1, 5 }
  0x50   : > { %v526_v28 = vor.u32 %v525_v8, %v522_v7  ;;  %v535_v48 = vrot.slane %v533_v47, 4  ;;  %v541_v46 = vrot.slane %v539_v0, 5  ;;  %v544_v22 = vshrl.u32 %v5168_v55, 16  ;;  %v5192_v47 = vld [vmem:[%s4809_s20 + $0x9c] sm:$0xf] }
  0x51   : > { %6056 = vst [vmem:[#allocation28_spill] sm:$0xff] %v5177_v33  ;;  %v508_v54 = vsel %vm4905_vm5, %v503_v27, %v507_v43  ;;  %v518_v5 = vsel %vm4905_vm5, %v513_v61, %v517_v24  ;;  %4052 = vmatmul.mubr.msk.bf16.gmra.mrb[8].mxu0 %vm689_vm2, %v5105_v23  ;;  %v547_v6 = vshll.u32 %v5168_v55, 16  ;;  %v553_v8 = vshll.u32 %v5175_v30, 16  ;;  %6058 = vst [vmem:[#allocation30_spill] sm:$0xff] %v5192_v47  ;;  %v5201_v24 = vld [vmem:[%s4809_s20 + $0xa0] sm:$0xf] }
  0x52   : > { %3924 = vmatmul.mubr.msk.bf16.gmra.mrb[16].mxu1 %vm689_vm2, %v5177_v33  ;;  %v5196_v39 = vcombine.low %v508_v54, %v518_v5  ;;  %v527_v17 = vrot.slane %v526_v28, 4  ;;  %v536_v43 = vor.u32 %v535_v48, %v531_v18  ;;  %4055 = vmatprep.mubr.msk.bf16.mxu0 %vm689_vm2, %v5130_v44  ;;  %v546_v51 = vrot.slane %v544_v22, 4  ;;  %6060 = vst [vmem:[#allocation32_spill] sm:$0xff] %v5201_v24  ;;  %v5210_v48 = vld [vmem:[%s4809_s20 + $0xa4] sm:$0x1] }
  0x53   : > { %v549_v7 = vrot.slane %v547_v6, 5  ;;  %v555_v1 = vrot.slane %v553_v8, 5  ;;  %v557_v0 = vshrl.u32 %v5175_v30, 16  ;;  %v563_v27 = vshll.u32 %v5180_v4, 16  ;;  %6061 = vst [vmem:[#allocation33_spill] sm:$0xff] %v5210_v48 }
  0x54   : > { %6059 = vst [vmem:[#allocation31_spill] sm:$0xff] %v5196_v39  ;;  %3927 = vmatprep.mubr.msk.bf16.mxu1 %vm689_vm2, %v5196_v39  ;;  %v532_v61 = vsel %vm4905_vm5, %v527_v17, %v531_v18  ;;  %v537_v28 = vrot.slane %v536_v43, 4  ;;  %v568_v22 = vshrl.u32 %v5192_v47, 16  ;;  %v571_v54 = vshll.u32 %v5192_v47, 16  ;;  %v5216_v23 = vld [vmem:[%s4809_s20 + $0xa8] sm:$0xf] }
  0x55   : > { %v550_v5 = vor.u32 %v549_v7, %v546_v51  ;;  %v559_v6 = vrot.slane %v557_v0, 4  ;;  %v565_v8 = vrot.slane %v563_v27, 5  ;;  %v577_v44 = vshll.u32 %v5201_v24, 16  ;;  %6062 = vst [vmem:[#allocation34_spill] sm:$0xff] %v5216_v23  ;;  %v5222_v43 = vld [vmem:[%s4809_s20 + $0xac] sm:$0xf] }
  0x56   : > { %v542_v4 = vsel %vm4905_vm5, %v537_v28, %v541_v46  ;;  %v570_v2 = vrot.slane %v568_v22, 4  ;;  %v573_v18 = vrot.slane %v571_v54, 5  ;;  %v581_v17 = vshrl.u32 %v5201_v24, 16  ;;  %6063 = vst [vmem:[#allocation35_spill] sm:$0xff] %v5222_v43  ;;  %v5273_v24 = vld [vmem:[%s4809_s20 + $0xc4] sm:$0xf] }
  0x57   : > { %v5224_v37 = vcombine.low %v532_v61, %v542_v4  ;;  %v551_v51 = vrot.slane %v550_v5, 4  ;;  %v560_v7 = vor.u32 %v559_v6, %v555_v1  ;;  %v579_v0 = vrot.slane %v577_v44, 5  ;;  %v5233_v4 = vld [vmem:[%s4809_s20 + $0xb0] sm:$0x1]  ;;  %v5242_v6 = vld [vmem:[%s4809_s20 + $0xb4] sm:$0xf] }
  0x58   : > { %v574_v27 = vor.u32 %v573_v18, %v570_v2  ;;  %v583_v60 = vrot.slane %v581_v17, 4  ;;  %v587_v47 = vshll.u32 %v5210_v48, 16  ;;  %v592_v46 = vshrl.u32 %v5216_v23, 16  ;;  %6065 = vst [vmem:[#allocation37_spill] sm:$0xff] %v5233_v4  ;;  %6066 = vst [vmem:[#allocation38_spill] sm:$0xff] %v5242_v6 }
  0x59   : > { %6064 = vst [vmem:[#allocation36_spill] sm:$0xff] %v5224_v37  ;;  %v556_v28 = vsel %vm4905_vm5, %v551_v51, %v555_v1  ;;  %v561_v22 = vrot.slane %v560_v7, 4  ;;  %4056 = vmatmul.mubr.msk.bf16.gmra.mrb[12].mxu0 %vm689_vm2, %v5149_v9  ;;  %v595_v61 = vshll.u32 %v5216_v23, 16  ;;  %v601_v44 = vshll.u32 %v5222_v43, 16  ;;  %v5248_v9 = vld [vmem:[%s4809_s20 + $0xb8] sm:$0xf] }
  0x5a   : > { %3928 = vmatmul.mubr.msk.bf16.gmra.mrb[20].mxu1 %vm689_vm2, %v5224_v37  ;;  %v575_v2 = vrot.slane %v574_v27, 4  ;;  %v584_v54 = vor.u32 %v583_v60, %v579_v0  ;;  %v589_v5 = vrot.slane %v587_v47, 5  ;;  %4059 = vmatprep.mubr.msk.bf16.mxu0 %vm689_vm2, %v5177_v33  ;;  %v594_v1 = vrot.slane %v592_v46, 4  ;;  %v5256_v23 = vld [vmem:[%s4809_s20 + $0xbc] sm:$0x1] }
  0x5b   : > { %v566_v18 = vsel %vm4905_vm5, %v561_v22, %v565_v8  ;;  %v597_v17 = vrot.slane %v595_v61, 5  ;;  %v603_v51 = vrot.slane %v601_v44, 5  ;;  %v605_v7 = vshrl.u32 %v5222_v43, 16  ;;  %6067 = vst [vmem:[#allocation39_spill] sm:$0xff] %v5256_v23 }
  0x5c   : > { %v5250_v27 = vcombine.low %v556_v28, %v566_v18  ;;  %v580_v60 = vsel %vm4905_vm5, %v575_v2, %v579_v0  ;;  %v585_v47 = vrot.slane %v584_v54, 4  ;;  %v611_v46 = vshll.u32 %v5233_v4, 16  ;;  %v5267_v2 = vld [vmem:[%s4809_s20 + $0xc0] sm:$0xf] }
  0x5d   : > { %v598_v33 = vor.u32 %v597_v17, %v594_v1  ;;  %v607_v48 = vrot.slane %v605_v7, 4  ;;  %v616_v8 = vshrl.u32 %v5242_v6, 16  ;;  %v619_v22 = vshll.u32 %v5242_v6, 16  ;;  %6068 = vst [vmem:[#allocation40_spill] sm:$0xff] %v5267_v2 }
  0x5e   : > { %3931 = vmatprep.mubr.msk.bf16.mxu1 %vm689_vm2, %v5250_v27  ;;  %v590_v28 = vsel %vm4905_vm5, %v585_v47, %v589_v5  ;;  %v613_v61 = vrot.slane %v611_v46, 5  ;;  %v625_v0 = vshll.u32 %v5248_v9, 16  ;;  %v629_v44 = vshrl.u32 %v5248_v9, 16 }
  0x5f   : > { %v5269_v54 = vcombine.low %v580_v60, %v590_v28  ;;  %v599_v1 = vrot.slane %v598_v33, 4  ;;  %v608_v18 = vor.u32 %v607_v48, %v603_v51  ;;  %v618_v17 = vrot.slane %v616_v8, 4 }
  0x60   : > { %v621_v7 = vrot.slane %v619_v22, 5  ;;  %v627_v4 = vrot.slane %v625_v0, 5  ;;  %v631_v6 = vrot.slane %v629_v44, 4  ;;  %v635_v43 = vshll.u32 %v5256_v23, 16 }
  0x61   : > { %v1236_v5 = vrot.slane %v4928_v19, 5  ;;  %v604_v47 = vsel %vm4905_vm5, %v599_v1, %v603_v51  ;;  %v609_v46 = vrot.slane %v608_v18, 4  ;;  %4060 = vmatmul.mubr.msk.bf16.gmra.mrb[16].mxu0 %vm689_vm2, %v5196_v39  ;;  %v1830_v33 = vshrl.u32 %v5267_v2, 16  ;;  %v5292_v51 = vld [vmem:[%s4809_s20 + $0xc8] sm:$0x1] }
  0x62   : > { %3932 = vmatmul.mubr.msk.bf16.gmra.mrb[24].mxu1 %vm689_vm2, %v5269_v54  ;;  %v622_v60 = vor.u32 %v621_v7, %v618_v17  ;;  %v632_v19 = vor.u32 %v631_v6, %v627_v4  ;;  %v637_v8 = vrot.slane %v635_v43, 5  ;;  %4063 = vmatprep.mubr.msk.bf16.mxu0 %vm689_vm2, %v5224_v37  ;;  %v1833_v22 = vshll.u32 %v5267_v2, 16 }
  0x63   : > { %v614_v28 = vsel %vm4905_vm5, %v609_v46, %v613_v61  ;;  %v1832_v0 = vrot.slane %v1830_v33, 4  ;;  %v1839_v44 = vshll.u32 %v5273_v24, 16  ;;  %v1843_v1 = vshrl.u32 %v5273_v24, 16 }
  0x64   : > { %v5299_v18 = vcombine.low %v604_v47, %v614_v28  ;;  %v623_v17 = vrot.slane %v622_v60, 4  ;;  %v633_v6 = vrot.slane %v632_v19, 4  ;;  %v1835_v43 = vrot.slane %v1833_v22, 5 }
  0x65   : > { %v1841_v7 = vrot.slane %v1839_v44, 5  ;;  %v1845_v39 = vrot.slane %v1843_v1, 4  ;;  %v1849_v37 = vshll.u32 %v5292_v51, 16  ;;  %v6071_v23 = vrot.slane %v4816_v13, 5 }
  0x66   : > { %v6072_v2 = vrot.slane %v4813_v12, 9  ;;  %3935 = vmatprep.mubr.msk.bf16.mxu1 %vm689_vm2, %v5299_v18  ;;  %v628_v47 = vsel %vm4905_vm5, %v623_v17, %v627_v4  ;;  %v638_v46 = vsel %vm4905_vm5, %v633_v6, %v637_v8  ;;  %v1836_v33 = vor.u32 %v1835_v43, %v1832_v0 }
  0x67   : > { %v1229_v60 = vrot.slane %v4896_v56, 5  ;;  %v5315_v19 = vcombine.low %v628_v47, %v638_v46  ;;  %v3489_v12 = vcombine.low %v4862_v36, %v4868_v41  ;;  %v1846_v13 = vor.u32 %v1845_v39, %v1841_v7 }
  0x68   : > { %v1227_v61 = vsel %vm5283_vm7, %v6072_v2, %v6071_v23  ;;  %v6073_v23 = vrot.slane %v4829_v20, 5  ;;  %v6074_v2 = vrot.slane %v4819_v14, 9  ;;  %v1837_v4 = vrot.slane %v1836_v33, 4 }
  0x69   : > { %v1851_v28 = vrot.slane %v1849_v37, 5  ;;  %v1230_v8 = vsel %vm5283_vm7, %v4851_v32, %v1229_v60  ;;  %v1237_v56 = vsel %vm5283_vm7, %v4901_v58, %v1236_v5  ;;  %4064 = vmatmul.mubr.msk.bf16.gmra.mrb[20].mxu0 %vm689_vm2, %v5250_v27  ;;  %v1847_v36 = vrot.slane %v1846_v13, 4 }
  0x6a   : > { %v1234_v22 = vsel %vm5283_vm7, %v6074_v2, %v6073_v23  ;;  %v5333_v20 = vcombine.low %v1227_v61, %v1230_v8  ;;  %v1240_v41 = vrot.slane %v4847_v31, 5  ;;  %3936 = vmatmul.mubr.msk.bf16.gmra.mrb[28].mxu1 %vm689_vm2, %v5315_v19  ;;  %4067 = vmatprep.mubr.msk.bf16.mxu0 %vm689_vm2, %v5269_v54  ;;  %v1842_v32 = vsel %vm4905_vm5, %v1837_v4, %v1841_v7  ;;  %v6075_v23 = vld [vmem:[#allocation32_spill] sm:$0xff]  ;;  %v6076_v2 = vld [vmem:[#allocation30_spill] sm:$0xff]  ;;  %v6077_v8 = vld [vmem:[#allocation23_spill] sm:$0xff] }
  0x6b   : > { %v5335_v14 = vcombine.low %v1234_v22, %v1237_v56  ;;  %3941 = vmatprep.mubr.msk.bf16.mxu1 %vm689_vm2, %v3489_v12  ;;  %v3524_v58 = vrot.slane %v4839_v25, 9  ;;  %v1247_v37 = vrot.slane %v4885_v50, 5  ;;  %v1852_v39 = vsel %vm4905_vm5, %v1847_v36, %v1851_v28  ;;  %v6078_v36 = vld [vmem:[#allocation35_spill] sm:$0xff] }
  0x6c   : > { %v1242_v5 = vrot.slane %v1240_v41, 4  ;;  %v1243_v31 = vrot.slane %v4957_v57, 5  ;;  %v5352_v0 = vcombine.low %v5088_v40, %v5102_v34  ;;  %v3525_v44 = vrot.slane %v4882_v49, 9 }
  0x6d   : > { %v5357_v1 = vcombine.low %v5115_v15, %v5127_v42  ;;  %v5359_v17 = vcombine.low %v1842_v32, %v1852_v39  ;;  %v1241_v25 = vsel %vm5283_vm7, %v3524_v58, %v1240_v41  ;;  %v1249_v50 = vrot.slane %v1247_v37, 4  ;;  %v6079_v41 = vld [vmem:[#allocation34_spill] sm:$0xff] }
  0x6e   : > { %v1250_v6 = vrot.slane %v4988_v63, 5  ;;  %v1244_v57 = vsel %vm5283_vm7, %v1242_v5, %v1243_v31  ;;  %v5368_v43 = vcombine.low %v5138_v26, %v5155_v11  ;;  %v3528_v49 = vrot.slane %v4961_v16, 9  ;;  %v6080_v31 = vld [vmem:[#allocation25_spill] sm:$0xff] }
  0x6f   : > { %v1268_v7 = vrot.slane %v4976_v29, 5  ;;  %v1248_v61 = vsel %vm5283_vm7, %v3525_v44, %v1247_v37  ;;  %v3526_v47 = vrot.slane %v4911_v62, 9  ;;  %v1254_v63 = vrot.slane %v4915_v3, 5 }
  0x70   : > { %v1271_v46 = vrot.slane %v5064_v10, 5  ;;  %v1257_v16 = vrot.slane %v5026_v45, 5  ;;  %v5388_v60 = vcombine.low %v5168_v55, %v5175_v30  ;;  %v5392_v62 = vcombine.low %v1241_v25, %v1244_v57 }
  0x71   : > { %4068 = vmatmul.mubr.msk.bf16.gmra.mrb[24].mxu0 %vm689_vm2, %v5299_v18  ;;  %v1269_v29 = vsel %vm5283_vm7, %v3528_v49, %v1268_v7  ;;  %v1270_v33 = vrot.slane %v1268_v7, 4  ;;  %v1275_v3 = vrot.slane %v5016_v53, 5  ;;  %v1278_v10 = vrot.slane %v5085_v52, 5  ;;  %v6082_v49 = vld [vmem:[#allocation5_spill] sm:$0xff] }
  0x72   : > { %3942 = vmatmul.mubr.msk.bf16.vlgmr.msra.gmra.mrb[0].mxu1 %vm689_vm2, %v4833_v21  ;;  %4071 = vmatprep.mubr.msk.bf16.mxu0 %vm689_vm2, %v5315_v19  ;;  %v3529_v21 = vrot.slane %v5005_v38, 9  ;;  %v1251_v12 = vsel %vm5283_vm7, %v1249_v50, %v1250_v6  ;;  %v5403_v22 = vcombine.low %v6076_v2, %v6075_v23  ;;  %v3530_v4 = vrot.slane %v5088_v40, 9  ;;  %v3537_v40 = vld [vmem:[%s5958_s1 + $0x8] sm:$0x7] }
  0x73   : > { %3945 = vmatprep.mubr.msk.bf16.mxu1 %vm689_vm2, %v4859_v35  ;;  %v1272_v13 = vsel %vm5283_vm7, %v1270_v33, %v1271_v46  ;;  %v1277_v53 = vrot.slane %v1275_v3, 4  ;;  %v1282_v52 = vrot.slane %v5102_v34, 5  ;;  %v1285_v56 = vrot.slane %v6077_v8, 5  ;;  %v6083_v33 = vld [vmem:[#allocation7_spill] sm:$0xff] }
  0x74   : > { %v5406_v28 = vcombine.low %v1269_v29, %v1272_v13  ;;  %v1276_v38 = vsel %vm5283_vm7, %v3529_v21, %v1275_v3  ;;  %v5414_v32 = vcombine.low %v6079_v41, %v6078_v36  ;;  %v3531_v58 = vrot.slane %v5115_v15, 9  ;;  %v6084_v21 = vld [vmem:[#allocation11_spill] sm:$0xff] }
  0x75   : > { %v1289_v37 = vrot.slane %v5127_v42, 5  ;;  %v1279_v39 = vsel %vm5283_vm7, %v1277_v53, %v1278_v10  ;;  %v1283_v34 = vsel %vm5283_vm7, %v3530_v4, %v1282_v52  ;;  %v1284_v5 = vrot.slane %v1282_v52, 4  ;;  %v6081_v42 = vld [vmem:[#allocation38_spill] sm:$0xff]  ;;  %v6085_v4 = vld [vmem:[#allocation27_spill] sm:$0xff]  ;;  %v6086_v53 = vld [vmem:[#allocation9_spill] sm:$0xff] }
  0x76   : > { %v1292_v44 = vrot.slane %v6080_v31, 5  ;;  %v5426_v25 = vcombine.low %v1276_v38, %v1279_v39  ;;  %v5432_v6 = vcombine.low %v6081_v42, %v5248_v9  ;;  %v1428_v7 = vand.u32 %v3537_v40, %v6082_v49 }
  0x77   : > { %v1290_v15 = vsel %vm5283_vm7, %v3531_v58, %v1289_v37  ;;  %v1291_v50 = vrot.slane %v1289_v37, 4  ;;  %v1286_v57 = vsel %vm5283_vm7, %v1284_v5, %v1285_v56  ;;  %v3532_v46 = vrot.slane %v5138_v26, 9  ;;  %v6087_v37 = vld [vmem:[#allocation29_spill] sm:$0xff] }
  0x78   : > { %v1296_v29 = vrot.slane %v5155_v11, 5  ;;  %v3527_v3 = vrot.slane %v6084_v21, 9  ;;  %v5446_v10 = vcombine.low %v1283_v34, %v1286_v57  ;;  %v1299_v38 = vrot.slane %v6085_v4, 5  ;;  %3973 = vmatprep.subr.bf16.mxu1 %v1428_v7  ;;  %v6089_v57 = vld [vmem:[#allocation33_spill] sm:$0xff] }
  0x79   : > { %4072 = vmatmul.mubr.msk.bf16.gmra.mrb[28].mxu0 %vm689_vm2, %v5359_v17  ;;  %v1293_v13 = vsel %vm5283_vm7, %v1291_v50, %v1292_v44  ;;  %v1256_v26 = vrot.slane %v1254_v63, 4  ;;  %3974 = vmatpush3.bf16.msra.mxu1 %v1428_v7  ;;  %v3533_v56 = vrot.slane %v5168_v55, 9  ;;  %v1303_v58 = vrot.slane %v5175_v30, 5  ;;  %v4631_v21 = vld [vmem:[%s4809_s20 + $0x4] sm:$0xf] }
  0x7a   : > { %3946 = vmatmul.mubr.msk.bf16.gmra.mrb[4].mxu1 %vm689_vm2, %v6083_v33  ;;  %4077 = vmatprep.mubr.msk.bf16.mxu0 %vm689_vm2, %v5333_v20  ;;  %v5453_v11 = vcombine.low %v1290_v15, %v1293_v13  ;;  %v1297_v52 = vsel %vm5283_vm7, %v3532_v46, %v1296_v29  ;;  %v1298_v8 = vrot.slane %v1296_v29, 4  ;;  %v1306_v40 = vrot.slane %v6087_v37, 5  ;;  %v6088_v15 = vld [vmem:[#allocation6_spill] sm:$0xff]  ;;  %v6091_v13 = vld [vmem:[#allocation37_spill] sm:$0xff]  ;;  %v6094_v37 = vld [vmem:[#allocation39_spill] sm:$0xff] }
  0x7b   : > { %3949 = vmatprep.mubr.msk.bf16.mxu1 %vm689_vm2, %v6086_v53  ;;  %v3534_v39 = vrot.slane %v6076_v2, 9  ;;  %v5461_v34 = vcombine.low %v1248_v61, %v1251_v12  ;;  %v1255_v5 = vsel %vm5283_vm7, %v3526_v47, %v1254_v63  ;;  %v1310_v44 = vrot.slane %v6075_v23, 5  ;;  %4279 = vmatprep.subr.bf16.mxu1 %v6088_v15  ;;  %v6090_v61 = vld [vmem:[#allocation12_spill] sm:$0xff] }
  0x7c   : > { %v1300_v31 = vsel %vm5283_vm7, %v1298_v8, %v1299_v38  ;;  %v1304_v55 = vsel %vm5283_vm7, %v3533_v56, %v1303_v58  ;;  %v1305_v30 = vrot.slane %v1303_v58, 4  ;;  %v1313_v2 = vrot.slane %v6089_v57, 5 }
  0x7d   : > { %v5469_v50 = vcombine.low %v1297_v52, %v1300_v31  ;;  %v1261_v12 = vrot.slane %v6090_v61, 5  ;;  %v1311_v47 = vsel %vm5283_vm7, %v3534_v39, %v1310_v44  ;;  %v1312_v63 = vrot.slane %v1310_v44, 4  ;;  %v6096_v31 = vld [vmem:[#allocation40_spill] sm:$0xff] }
  0x7e   : > { %v3535_v7 = vrot.slane %v6079_v41, 9  ;;  %v1258_v23 = vsel %vm5283_vm7, %v1256_v26, %v1257_v16  ;;  %v1307_v46 = vsel %vm5283_vm7, %v1305_v30, %v1306_v40  ;;  %v1317_v29 = vrot.slane %v6078_v36, 5  ;;  %v3643_v16 = vld [vmem:[%s5958_s1 + $0x1c] sm:$0x7]  ;;  %v6092_v26 = vld [vmem:[#allocation10_spill] sm:$0xff] }
  0x7f   : > { %v1320_v4 = vrot.slane %v6091_v13, 5  ;;  %v5488_v38 = vcombine.low %v1304_v55, %v1307_v46  ;;  %v1314_v41 = vsel %vm5283_vm7, %v1312_v63, %v1313_v2  ;;  %v3536_v45 = vrot.slane %v6081_v42, 9  ;;  %v6093_v36 = vld [vmem:[#allocation8_spill] sm:$0xff]  ;;  %v6095_v42 = vld [vmem:[#allocation14_spill] sm:$0xff] }
  0x80   : > { %v1324_v52 = vrot.slane %v5248_v9, 5  ;;  %v5500_v8 = vcombine.low %v1311_v47, %v1314_v41  ;;  %v1318_v56 = vsel %vm5283_vm7, %v3535_v7, %v1317_v29  ;;  %v1319_v58 = vrot.slane %v1317_v29, 4 }
  0x81   : > { %4078 = vmatmul.mubr.msk.bf16.vlgmr.msra.gmra.mrb[0].mxu0 %vm689_vm2, %v5335_v14  ;;  %v1327_v40 = vrot.slane %v6094_v37, 5  ;;  %v3606_v44 = vrot.slane %v6096_v31, 9  ;;  %v2060_v55 = vrot.slane %v5273_v24, 5  ;;  %v2063_v57 = vrot.slane %v5292_v51, 5 }
  0x82   : > { %3950 = vmatmul.mubr.msk.bf16.gmra.mrb[8].mxu1 %vm689_vm2, %v6092_v26  ;;  %4110 = vmatpush3.bf16.msra.mxu0 %v6093_v36  ;;  %v1325_v9 = vsel %vm5283_vm7, %v3536_v45, %v1324_v52  ;;  %v1326_v39 = vrot.slane %v1324_v52, 4  ;;  %v1321_v30 = vsel %vm5283_vm7, %v1319_v58, %v1320_v4  ;;  %v2508_v2 = vand.u32 %v3643_v16, %v6082_v49  ;;  %v6097_v4 = vld [vmem:[#allocation19_spill] sm:$0xff]  ;;  %v6099_v16 = vld [vmem:[#allocation17_spill] sm:$0xff] }
  0x83   : > { %3953 = vmatprep.mubr.msk.bf16.mxu1 %vm689_vm2, %v6095_v42  ;;  %4081 = vmatprep.mubr.msk.bf16.mxu0 %vm689_vm2, %v5392_v62  ;;  %v5519_v61 = vcombine.low %v6096_v31, %v5273_v24  ;;  %v5521_v47 = vcombine.low %v1318_v56, %v1321_v30  ;;  %v2061_v7 = vsel %vm5283_vm7, %v3606_v44, %v2060_v55  ;;  %v2062_v46 = vrot.slane %v2060_v55, 4  ;;  %v6098_v52 = vld [vmem:[#allocation15_spill] sm:$0xff]  ;;  %v4633_v58 = vld [vmem:[%s4809_s20] sm:$0xf]  ;;  %v6110_v30 = vld [vmem:[#allocation36_spill] sm:$0xff] }
  0x84   : > { %v1328_v63 = vsel %vm5283_vm7, %v1326_v39, %v1327_v40  ;;  %v5527_v29 = vcombine.low %v1255_v5, %v1258_v23  ;;  %v1263_v13 = vrot.slane %v1261_v12, 4  ;;  %v1264_v51 = vrot.slane %v6097_v4, 5  ;;  %4143 = vmatprep.subr.bf16.mxu0 %v2508_v2  ;;  %v2932_v55 = vld [vmem:[%s5959_s2] sm:$0x7] }
  0x85   : > { %v5530_v41 = vcombine.low %v1325_v9, %v1328_v63  ;;  %v2064_v24 = vsel %vm5283_vm7, %v2062_v46, %v2063_v57  ;;  %v1262_v5 = vsel %vm5283_vm7, %v3527_v3, %v1261_v12  ;;  %v1219_v3 = vrot.slane %v4631_v21, 5  ;;  %v4632_v12 = vld [vmem:[%s4809_s20 + $0x8] sm:$0x1] }
  0x86   : > { %v5534_v45 = vcombine.low %v2061_v7, %v2064_v24  ;;  %v1265_v23 = vsel %vm5283_vm7, %v1263_v13, %v1264_v51  ;;  %v1222_v56 = vrot.slane %v4632_v12, 5  ;;  %v3521_v37 = vrot.slane %v4633_v58, 9  ;;  %v250_v24 = vld [vmem:[%s4809_s20 + $0xd4] sm:$0x1] }
  0x87   : > { %v5550_v36 = vcombine.low %v1262_v5, %v1265_v23  ;;  %v1221_v40 = vrot.slane %v1219_v3, 4  ;;  %v2934_v57 = vand.u32 %v2932_v55, %v6082_v49  ;;  %v2495_v5 = vshll.u32 %v250_v24, 16 }
  0x88   : > { %v1220_v9 = vsel %vm5283_vm7, %v3521_v37, %v1219_v3 }
  0x89   : > { %4082 = vmatmul.mubr.msk.bf16.gmra.mrb[4].mxu0 %vm689_vm2, %v5461_v34  ;;  %v1223_v39 = vsel %vm5283_vm7, %v1221_v40, %v1222_v56  ;;  %v2497_v21 = vrot.slane %v2495_v5, 5 }
  0x8a   : > { %3954 = vmatmul.mubr.msk.bf16.gmra.mrb[12].mxu1 %vm689_vm2, %v6098_v52  ;;  %4085 = vmatprep.mubr.msk.bf16.mxu0 %vm689_vm2, %v5527_v29  ;;  %v3538_v31 = vcombine.low %v1220_v9, %v1223_v39 }
  0x8b   : > { %3957 = vmatprep.mubr.msk.bf16.mxu1 %vm689_vm2, %v6099_v16 }
  0x91   : > { %4086 = vmatmul.mubr.msk.bf16.gmra.mrb[8].mxu0 %vm689_vm2, %v5550_v36 }
  0x92   : > { %3958 = vmatmul.mubr.msk.bf16.gmra.mrb[16].mxu1 %vm689_vm2, %v5352_v0  ;;  %4089 = vmatprep.mubr.msk.bf16.mxu0 %vm689_vm2, %v5406_v28 }
  0x93   : > { %3961 = vmatprep.mubr.msk.bf16.mxu1 %vm689_vm2, %v5357_v1 }
  0x99   : > { %4090 = vmatmul.mubr.msk.bf16.gmra.mrb[12].mxu0 %vm689_vm2, %v5426_v25 }
  0x9a   : > { %3962 = vmatmul.mubr.msk.bf16.gmra.mrb[20].mxu1 %vm689_vm2, %v5368_v43  ;;  %4093 = vmatprep.mubr.msk.bf16.mxu0 %vm689_vm2, %v5446_v10 }
  0x9b   : > { %3965 = vmatprep.mubr.msk.bf16.mxu1 %vm689_vm2, %v5388_v60 }
  0xa1   : > { %4094 = vmatmul.mubr.msk.bf16.gmra.mrb[16].mxu0 %vm689_vm2, %v5453_v11 }
  0xa2   : > { %3966 = vmatmul.mubr.msk.bf16.gmra.mrb[24].mxu1 %vm689_vm2, %v5403_v22  ;;  %4097 = vmatprep.mubr.msk.bf16.mxu0 %vm689_vm2, %v5469_v50 }
  0xa3   : > { %3969 = vmatprep.mubr.msk.bf16.mxu1 %vm689_vm2, %v5414_v32 }
  0xa9   : > { %4098 = vmatmul.mubr.msk.bf16.gmra.mrb[20].mxu0 %vm689_vm2, %v5488_v38 }
  0xaa   : > { %3970 = vmatmul.mubr.msk.bf16.gmra.mrb[28].mxu1 %vm689_vm2, %v5432_v6  ;;  %4101 = vmatprep.mubr.msk.bf16.mxu0 %vm689_vm2, %v5500_v8 }
  0xab   : > { %3975 = vmatprep.mubr.msk.bf16.mxu1 %vm689_vm2, %v3538_v31 }
  0xb1   : > { %4102 = vmatmul.mubr.msk.bf16.gmra.mrb[24].mxu0 %vm689_vm2, %v5521_v47 }
  0xb2   : > { %3976 = vmatmul.mubr.msk.bf16.vlgmr.msra.gmra.mrb[0].mxu1 %vm689_vm2, %v5333_v20  ;;  %4105 = vmatprep.mubr.msk.bf16.mxu0 %vm689_vm2, %v5530_v41  ;;  %v3662_v20 = vld [vmem:[%s5958_s1 + $0x20] sm:$0x7] }
  0xb3   : > { %3979 = vmatprep.mubr.msk.bf16.mxu1 %vm689_vm2, %v5335_v14  ;;  %4280 = vmatpush3.bf16.msra.mxu1 %v6088_v15  ;;  %v2720_v44 = vand.u32 %v3662_v20, %v6082_v49  ;;  %v6105_v15 = vld [vmem:[#allocation13_spill] sm:$0xff] }
  0xb4   : > { %4211 = vmatprep.subr.bf16.mxu1 %v2934_v57 }
  0xb9   : > { %4106 = vmatmul.mubr.msk.bf16.gmra.mrb[28].mxu0 %vm689_vm2, %v5534_v45 }
  0xba   : > { %3980 = vmatmul.mubr.msk.bf16.gmra.mrb[4].mxu1 %vm689_vm2, %v5392_v62  ;;  %4111 = vmatprep.mubr.msk.bf16.mxu0 %vm689_vm2, %v4859_v35  ;;  %v5666_v35 = vld [vmem:[%s4809_s20 + $0xcc] sm:$0xf] }
  0xbb   : > { %3983 = vmatprep.mubr.msk.bf16.mxu1 %vm689_vm2, %v5461_v34 }
  0xc1   : > { %4112 = vmatmul.mubr.msk.bf16.vlgmr.msra.gmra.mrb[0].mxu0 %vm689_vm2, %v6083_v33  ;;  %v5669_v33 = vld [vmem:[%s4809_s20 + $0xd0] sm:$0xf]  ;;  %s3388_s20 = sshll.u32 %s5871_s13, 4  ;;  %s5909_s20 = int_to_ptr.vmem [resolvable:$true] %s3388_s20 }
  0xc2   : > { %3984 = vmatmul.mubr.msk.bf16.gmra.mrb[8].mxu1 %vm689_vm2, %v5527_v29  ;;  %4144 = vmatpush3.bf16.msra.mxu0 %v2508_v2  ;;  %v2476_v2 = vshrl.u32 %v5666_v35, 16  ;;  %v2489_v63 = vshrl.u32 %v5669_v33, 16  ;;  %v2485_v7 = vshll.u32 %v5669_v33, 16  ;;  %s4634_s28 = scalar_lea.vmem %s5909_s20, 4096  ;;  %p4641_p0 = scmp.lt.s32.totalorder %s5909_s20, %s4639_s30 }
  0xc3   : > { %3987 = vmatprep.mubr.msk.bf16.mxu1 %vm689_vm2, %v5550_v36  ;;  %4115 = vmatprep.mubr.msk.bf16.mxu0 %vm689_vm2, %v6086_v53  ;;  %v3626_v53 = vcombine.low %v5666_v35, %v5669_v33  ;;  %p4635_p11 = scmp.ne.s32.totalorder %s5909_s20, %s4634_s28  ;;  %p4642_p1 = scmp.lt.s32.totalorder %s4640_s5, %s4634_s28 }
  0xc4   : > { %4177 = vmatprep.subr.bf16.mxu0 %v2720_v44  ;;  %v2478_v46 = vrot.slane %v2476_v2, 4  ;;  %v2487_v4 = vrot.slane %v2485_v7, 5  ;;  %v2491_v51 = vrot.slane %v2489_v63, 4 }
  0xc5   : > { %p4636_p12 = pnand %p4635_p11, %p4765_p5  ;;  %p4643_p2 = por %p4642_p1, %p4641_p0 }
  0xc7   : > { %p4637_p13 = pneg %p4636_p12 }
  0xc9   : > { %4116 = vmatmul.mubr.msk.bf16.gmra.mrb[4].mxu0 %vm689_vm2, %v6092_v26  ;;  %v6107_v26 = vld [vmem:[#allocation26_spill] sm:$0xff]  ;;  %p4644_p3 = pnand %p4643_p2, %p4637_p13 }
  0xca   : > { %3988 = vmatmul.mubr.msk.bf16.gmra.mrb[12].mxu1 %vm689_vm2, %v5406_v28  ;;  %4119 = vmatprep.mubr.msk.bf16.mxu0 %vm689_vm2, %v6095_v42  ;;  %v6109_v42 = vld [vmem:[#allocation31_spill] sm:$0xff] }
  0xcb   : > { %3991 = vmatprep.mubr.msk.bf16.mxu1 %vm689_vm2, %v5426_v25 }
  0xd1   : > { %4120 = vmatmul.mubr.msk.bf16.gmra.mrb[8].mxu0 %vm689_vm2, %v6098_v52  ;;  %v2492_v52 = vor.u32 %v2491_v51, %v2487_v4 }
  0xd2   : > { %3992 = vmatmul.mubr.msk.bf16.gmra.mrb[16].mxu1 %vm689_vm2, %v5446_v10  ;;  %4123 = vmatprep.mubr.msk.bf16.mxu0 %vm689_vm2, %v6099_v16 }
  0xd3   : > { %3995 = vmatprep.mubr.msk.bf16.mxu1 %vm689_vm2, %v5453_v11  ;;  %v2493_v16 = vrot.slane %v2492_v52, 4 }
  0xd5   : > { %v2498_v12 = vsel %vm4905_vm5, %v2493_v16, %v2497_v21 }
  0xd9   : > { %4124 = vmatmul.mubr.msk.bf16.gmra.mrb[12].mxu0 %vm689_vm2, %v5352_v0 }
  0xda   : > { %3996 = vmatmul.mubr.msk.bf16.gmra.mrb[20].mxu1 %vm689_vm2, %v5469_v50  ;;  %4127 = vmatprep.mubr.msk.bf16.mxu0 %vm689_vm2, %v5357_v1 }
  0xdb   : > { %3999 = vmatprep.mubr.msk.bf16.mxu1 %vm689_vm2, %v5488_v38 }
  0xe1   : > { %4128 = vmatmul.mubr.msk.bf16.gmra.mrb[16].mxu0 %vm689_vm2, %v5368_v43 }
  0xe2   : > { %4000 = vmatmul.mubr.msk.bf16.gmra.mrb[24].mxu1 %vm689_vm2, %v5500_v8  ;;  %4131 = vmatprep.mubr.msk.bf16.mxu0 %vm689_vm2, %v5388_v60 }
  0xe3   : > { %4003 = vmatprep.mubr.msk.bf16.mxu1 %vm689_vm2, %v5521_v47 }
  0xe9   : > { %4132 = vmatmul.mubr.msk.bf16.gmra.mrb[20].mxu0 %vm689_vm2, %v5403_v22 }
  0xea   : > { %4004 = vmatmul.mubr.msk.bf16.gmra.mrb[28].mxu1 %vm689_vm2, %v5530_v41  ;;  %4135 = vmatprep.mubr.msk.bf16.mxu0 %vm689_vm2, %v5414_v32 }
  0xeb   : > { %4025 = vmatprep.mubr.msk.bf16.mxu1 %vm689_vm2, %v5352_v0  ;;  %v6100_v0 = vld [vmem:[#allocation16_spill] sm:$0xff] }
  0xf1   : > { %4136 = vmatmul.mubr.msk.bf16.gmra.mrb[24].mxu0 %vm689_vm2, %v5432_v6 }
  0xf2   : > { %4026 = vmatmul.mubr.msk.bf16.vlgmr.msra.gmra.mrb[16].mxu1 %vm689_vm2, %v5357_v1  ;;  %4139 = vmatprep.mubr.msk.bf16.mxu0 %vm689_vm2, %v5519_v61  ;;  %v6101_v1 = vld [vmem:[#allocation18_spill] sm:$0xff] }
  0xf3   : > { %4029 = vmatprep.mubr.msk.bf16.mxu1 %vm689_vm2, %v5368_v43  ;;  %v6102_v43 = vld [vmem:[#allocation20_spill] sm:$0xff]  ;;  %4212 = vmatpush3.bf16.msra.mxu1 %v2934_v57 }
  0xf4   : > { %4569 = vmatprep.subr.msk.bf16.mxu1 %vm738_vm0, %v2931_v59 }
  0xf9   : > { %4140 = vmatmul.mubr.msk.bf16.gmra.mrb[28].mxu0 %vm689_vm2, %v3626_v53 }
  0xfa   : > { %4030 = vmatmul.mubr.msk.bf16.gmra.mrb[20].mxu1 %vm689_vm2, %v5388_v60  ;;  %4145 = vmatprep.mubr.msk.bf16.mxu0 %vm689_vm2, %v6100_v0  ;;  %v6103_v60 = vld [vmem:[#allocation21_spill] sm:$0xff] }
  0xfb   : > { %4033 = vmatprep.mubr.msk.bf16.mxu1 %vm689_vm2, %v5403_v22  ;;  %v6104_v22 = vld [vmem:[#allocation22_spill] sm:$0xff] }
 0x101   : > { %4146 = vmatmul.mubr.msk.bf16.vlgmr.msra.gmra.mrb[0].mxu0 %vm689_vm2, %v6101_v1 }
 0x102   : > { %4034 = vmatmul.mubr.msk.bf16.gmra.mrb[24].mxu1 %vm689_vm2, %v5414_v32  ;;  %4178 = vmatpush3.bf16.msra.mxu0 %v2720_v44  ;;  %v6106_v32 = vld [vmem:[#allocation24_spill] sm:$0xff] }
 0x103   : > { %4037 = vmatprep.mubr.msk.bf16.mxu1 %vm689_vm2, %v5432_v6  ;;  %4149 = vmatprep.mubr.msk.bf16.mxu0 %vm689_vm2, %v6102_v43  ;;  %v6108_v6 = vld [vmem:[#allocation28_spill] sm:$0xff] }
 0x109   : > { %4150 = vmatmul.mubr.msk.bf16.gmra.mrb[4].mxu0 %vm689_vm2, %v6103_v60 }
 0x10a   : > { %4038 = vmatmul.mubr.msk.bf16.gmra.mrb[28].mxu1 %vm689_vm2, %v5519_v61  ;;  %4153 = vmatprep.mubr.msk.bf16.mxu0 %vm689_vm2, %v6104_v22  ;;  %v2479_v61 = vshll.u32 %v5666_v35, 16 }
 0x10b   : > { %4213 = vmatprep.mubr.msk.bf16.mxu1 %vm689_vm2, %v6105_v15 }
 0x10c   : > { %v2481_v13 = vrot.slane %v2479_v61, 5 }
 0x10e   : > { %v2482_v49 = vor.u32 %v2481_v13, %v2478_v46 }
 0x110   : > { %v2483_v23 = vrot.slane %v2482_v49, 4 }
 0x111   : > { %4154 = vmatmul.mubr.msk.bf16.gmra.mrb[8].mxu0 %vm689_vm2, %v6106_v32 }
 0x112   : > { %4157 = vmatprep.mubr.msk.bf16.mxu0 %vm689_vm2, %v6107_v26  ;;  %4214 = vmatmul.mubr.msk.bf16.vlgmr.msra.gmra.mrb[32].mxu1 %vm689_vm2, %v6100_v0  ;;  %v2488_v3 = vsel %vm4905_vm5, %v2483_v23, %v2487_v4 }
 0x113   : > { %4217 = vmatprep.mubr.msk.bf16.mxu1 %vm689_vm2, %v6101_v1  ;;  %v3644_v56 = vcombine.low %v2488_v3, %v2498_v12 }
 0x119   : > { %4158 = vmatmul.mubr.msk.bf16.gmra.mrb[12].mxu0 %vm689_vm2, %v6108_v6 }
 0x11a   : > { %4161 = vmatprep.mubr.msk.bf16.mxu0 %vm689_vm2, %v6109_v42  ;;  %4218 = vmatmul.mubr.msk.bf16.gmra.mrb[36].mxu1 %vm689_vm2, %v6102_v43 }
 0x11b   : > { %4221 = vmatprep.mubr.msk.bf16.mxu1 %vm689_vm2, %v6103_v60 }
 0x121   : > { %4162 = vmatmul.mubr.msk.bf16.gmra.mrb[16].mxu0 %vm689_vm2, %v6110_v30 }
 0x122   : > { %4165 = vmatprep.mubr.msk.bf16.mxu0 %vm689_vm2, %v5250_v27  ;;  %4222 = vmatmul.mubr.msk.bf16.gmra.mrb[40].mxu1 %vm689_vm2, %v6104_v22 }
 0x123   : > { %4225 = vmatprep.mubr.msk.bf16.mxu1 %vm689_vm2, %v6106_v32 }
 0x129   : > { %4166 = vmatmul.mubr.msk.bf16.gmra.mrb[20].mxu0 %vm689_vm2, %v5269_v54 }
 0x12a   : > { %4169 = vmatprep.mubr.msk.bf16.mxu0 %vm689_vm2, %v5299_v18  ;;  %4226 = vmatmul.mubr.msk.bf16.gmra.mrb[44].mxu1 %vm689_vm2, %v6107_v26 }
 0x12b   : > { %4229 = vmatprep.mubr.msk.bf16.mxu1 %vm689_vm2, %v6108_v6 }
 0x131   : > { %4170 = vmatmul.mubr.msk.bf16.gmra.mrb[24].mxu0 %vm689_vm2, %v5315_v19 }
 0x132   : > { %4173 = vmatprep.mubr.msk.bf16.mxu0 %vm689_vm2, %v5359_v17  ;;  %4230 = vmatmul.mubr.msk.bf16.gmra.mrb[48].mxu1 %vm689_vm2, %v6109_v42 }
 0x133   : > { %4233 = vmatprep.mubr.msk.bf16.mxu1 %vm689_vm2, %v6110_v30 }
 0x139   : > { %4174 = vmatmul.mubr.msk.bf16.gmra.mrb[28].mxu0 %vm689_vm2, %v3644_v56 }
 0x13a   : > { %4179 = vmatprep.mubr.msk.bf16.mxu0 %vm689_vm2, %v5335_v14  ;;  %4234 = vmatmul.mubr.msk.bf16.gmra.mrb[52].mxu1 %vm689_vm2, %v5250_v27  ;;  %v3147_v27 = vsel %vm738_vm0, %v2931_v59, 0  ;;  %v2709_v14 = vrot.slane %v250_v24, 5 }
 0x13b   : > { %4237 = vmatprep.mubr.msk.bf16.mxu1 %vm689_vm2, %v5269_v54  ;;  %4246 = vmatpush3.bf16.msra.mxu1 %v3147_v27  ;;  %v2706_v54 = vrot.slane %v5669_v33, 5 }
 0x141   : > { %4180 = vmatmul.mubr.msk.bf16.vlgmr.msra.gmra.mrb[0].mxu0 %vm689_vm2, %v5392_v62 }
 0x142   : > { %4183 = vmatprep.mubr.msk.bf16.mxu0 %vm689_vm2, %v5461_v34  ;;  %4238 = vmatmul.mubr.msk.bf16.gmra.mrb[56].mxu1 %vm689_vm2, %v5299_v18  ;;  %v3661_v18 = vrot.slane %v5666_v35, 9 }
 0x143   : > { %4241 = vmatprep.mubr.msk.bf16.mxu1 %vm689_vm2, %v5315_v19  ;;  %v2708_v19 = vrot.slane %v2706_v54, 4 }
 0x145   : > { %v2710_v62 = vsel %vm5283_vm7, %v2708_v19, %v2709_v14 }
 0x149   : > { %4184 = vmatmul.mubr.msk.bf16.gmra.mrb[4].mxu0 %vm689_vm2, %v5527_v29 }
 0x14a   : > { %4187 = vmatprep.mubr.msk.bf16.mxu0 %vm689_vm2, %v5550_v36  ;;  %4242 = vmatmul.mubr.msk.bf16.gmra.mrb[60].mxu1 %vm689_vm2, %v5359_v17  ;;  %v2707_v17 = vsel %vm5283_vm7, %v3661_v18, %v2706_v54 }
 0x151   : > { %4188 = vmatmul.mubr.msk.bf16.gmra.mrb[8].mxu0 %vm689_vm2, %v5406_v28  ;;  %v3663_v28 = vcombine.low %v2707_v17, %v2710_v62 }
 0x152   : > { %4191 = vmatprep.mubr.msk.bf16.mxu0 %vm689_vm2, %v5426_v25 }
 0x159   : > { %4192 = vmatmul.mubr.msk.bf16.gmra.mrb[12].mxu0 %vm689_vm2, %v5446_v10 }
 0x15a   : > { %4195 = vmatprep.mubr.msk.bf16.mxu0 %vm689_vm2, %v5453_v11 }
 0x161   : > { %4196 = vmatmul.mubr.msk.bf16.gmra.mrb[16].mxu0 %vm689_vm2, %v5469_v50 }
 0x162   : > { %4199 = vmatprep.mubr.msk.bf16.mxu0 %vm689_vm2, %v5488_v38 }
 0x169   : > { %4200 = vmatmul.mubr.msk.bf16.gmra.mrb[20].mxu0 %vm689_vm2, %v5500_v8 }
 0x16a   : > { %4203 = vmatprep.mubr.msk.bf16.mxu0 %vm689_vm2, %v5521_v47 }
 0x171   : > { %4204 = vmatmul.mubr.msk.bf16.gmra.mrb[24].mxu0 %vm689_vm2, %v5530_v41 }
 0x172   : > { %4207 = vmatprep.mubr.msk.bf16.mxu0 %vm689_vm2, %v5534_v45 }
 0x179   : > { %4208 = vmatmul.mubr.msk.bf16.gmra.mrb[28].mxu0 %vm689_vm2, %v3663_v28 }
 0x185   : > { %v3977_v25 = vpop.f32.mrb[0].mxu1 }
 0x186   : > { %v1464_v10 = vpop.f32.mrb[1].mxu1 }
 0x187   : > { %v3978_v11 = vpop.f32.mrb[2].mxu1 }
 0x188   : > { %v1467_v34 = vpop.f32.mrb[3].mxu1 }
 0x18d   : > { %v3981_v50 = vpop.f32.mrb[4].mxu1 }
 0x18e   : > { %v1480_v38 = vpop.f32.mrb[5].mxu1 }
 0x18f   : > { %v3982_v8 = vpop.f32.mrb[6].mxu1 }
 0x190   : > { %v1483_v47 = vpop.f32.mrb[7].mxu1 }
 0x195   : > { %v3985_v29 = vpop.f32.mrb[8].mxu1 }
 0x196   : > { %v1496_v41 = vpop.f32.mrb[9].mxu1 }
 0x197   : > { %v3986_v45 = vpop.f32.mrb[10].mxu1 }
 0x198   : > { %v1499_v36 = vpop.f32.mrb[11].mxu1 }
 0x19d   : > { %v3989_v58 = vpop.f32.mrb[12].mxu1 }
 0x19e   : > { %v1512_v37 = vpop.f32.mrb[13].mxu1 }
 0x19f   : > { %v3990_v40 = vpop.f32.mrb[14].mxu1 }
 0x1a0   : > { %v1515_v48 = vpop.f32.mrb[15].mxu1 }
 0x1c5   : > { %v5804_v9 = vpop.f32.mrb[16].mxu1 }
 0x1c6   : > { %v5806_v39 = vpop.f32.mrb[17].mxu1 }
 0x1c7   : > { %v5808_v31 = vpop.f32.mrb[18].mxu1 }
 0x1c8   : > { %v5810_v20 = vpop.f32.mrb[19].mxu1 }
 0x1cd   : > { %v5812_v44 = vpop.f32.mrb[20].mxu1 }
 0x1ce   : > { %v5814_v35 = vpop.f32.mrb[21].mxu1 }
 0x1cf   : > { %v5816_v33 = vpop.f32.mrb[22].mxu1 }
 0x1d0   : > { %v5818_v53 = vpop.f32.mrb[23].mxu1 }
 0x1d5   : > { %v5820_v0 = vpop.f32.mrb[24].mxu1 }
 0x1d6   : > { %v5822_v1 = vpop.f32.mrb[25].mxu1 }
 0x1d7   : > { %v5824_v43 = vpop.f32.mrb[26].mxu1 }
 0x1d8   : > { %v5826_v60 = vpop.f32.mrb[27].mxu1 }
 0x1dd   : > { %v5828_v22 = vpop.f32.mrb[28].mxu1 }
 0x1de   : > { %v5830_v15 = vpop.f32.mrb[29].mxu1 }
 0x1df   : > { %v5832_v32 = vpop.f32.mrb[30].mxu1 }
 0x1e0   : > { %v5834_v26 = vpop.f32.mrb[31].mxu1 }
 0x214   : > { %v4181_v6 = vpop.f32.mrb[0].mxu0 }
 0x215   : > { %v4281_v42 = vadd.f32 %v4181_v6, %v3977_v25  ;;  %v2756_v55 = vpop.f32.mrb[1].mxu0 }
 0x216   : > { %v4282_v30 = vadd.f32 %v2756_v55, %v1464_v10  ;;  %v4182_v57 = vpop.f32.mrb[2].mxu0 }
 0x217   : > { %v4283_v2 = vadd.f32 %v4182_v57, %v3978_v11  ;;  %v2759_v61 = vpop.f32.mrb[3].mxu0 }
 0x218   : > { %v4284_v63 = vadd.f32 %v2759_v61, %v1467_v34 }
 0x219   : > { %v2916_v7 = vpack.c.bf16 %v4283_v2, %v4281_v42 }
 0x21a   : > { %v2915_v46 = vpack.c.bf16 %v4284_v63, %v4282_v30 }
 0x21c   : > { %v4185_v13 = vpop.f32.mrb[4].mxu0  ;;  %4247 = vmatprep.mubr.msk.bf16.mxu1 %vm3097_vm8, %v2915_v46 }
 0x21d   : > { %v4285_v4 = vadd.f32 %v4185_v13, %v3981_v50  ;;  %v2772_v51 = vpop.f32.mrb[5].mxu0  ;;  %4248 = vmatmul.mubr.msk.bf16.vlgmr.msra.gmra.mrb[32].mxu1 %vm3097_vm8, %v2916_v7 }
 0x21e   : > { %v4286_v24 = vadd.f32 %v2772_v51, %v1480_v38  ;;  %v4186_v49 = vpop.f32.mrb[6].mxu0 }
 0x21f   : > { %v4287_v52 = vadd.f32 %v4186_v49, %v3982_v8  ;;  %v2775_v5 = vpop.f32.mrb[7].mxu0 }
 0x220   : > { %v4288_v23 = vadd.f32 %v2775_v5, %v1483_v47 }
 0x221   : > { %v2918_v16 = vpack.c.bf16 %v4287_v52, %v4285_v4 }
 0x222   : > { %v2917_v21 = vpack.c.bf16 %v4288_v23, %v4286_v24 }
 0x224   : > { %v4189_v3 = vpop.f32.mrb[8].mxu0  ;;  %4251 = vmatprep.mubr.msk.bf16.mxu1 %vm3097_vm8, %v2917_v21 }
 0x225   : > { %v4289_v12 = vadd.f32 %v4189_v3, %v3985_v29  ;;  %v2788_v56 = vpop.f32.mrb[9].mxu0  ;;  %4252 = vmatmul.mubr.msk.bf16.gmra.mrb[36].mxu1 %vm3097_vm8, %v2918_v16 }
 0x226   : > { %v4290_v59 = vadd.f32 %v2788_v56, %v1496_v41  ;;  %v4190_v27 = vpop.f32.mrb[10].mxu0 }
 0x227   : > { %v4291_v54 = vadd.f32 %v4190_v27, %v3986_v45  ;;  %v2791_v18 = vpop.f32.mrb[11].mxu0 }
 0x228   : > { %v4292_v19 = vadd.f32 %v2791_v18, %v1499_v36 }
 0x229   : > { %v2920_v14 = vpack.c.bf16 %v4291_v54, %v4289_v12 }
 0x22a   : > { %v2919_v17 = vpack.c.bf16 %v4292_v19, %v4290_v59 }
 0x22c   : > { %v4193_v62 = vpop.f32.mrb[12].mxu0  ;;  %4255 = vmatprep.mubr.msk.bf16.mxu1 %vm3097_vm8, %v2919_v17 }
 0x22d   : > { %v4293_v28 = vadd.f32 %v4193_v62, %v3989_v58  ;;  %v2804_v25 = vpop.f32.mrb[13].mxu0  ;;  %4256 = vmatmul.mubr.msk.bf16.gmra.mrb[40].mxu1 %vm3097_vm8, %v2920_v14 }
 0x22e   : > { %v4294_v10 = vadd.f32 %v2804_v25, %v1512_v37  ;;  %v4194_v11 = vpop.f32.mrb[14].mxu0 }
 0x22f   : > { %v4295_v34 = vadd.f32 %v4194_v11, %v3990_v40  ;;  %v2807_v50 = vpop.f32.mrb[15].mxu0 }
 0x230   : > { %v4296_v38 = vadd.f32 %v2807_v50, %v1515_v48 }
 0x231   : > { %v2922_v8 = vpack.c.bf16 %v4295_v34, %v4293_v28 }
 0x232   : > { %v2921_v47 = vpack.c.bf16 %v4296_v38, %v4294_v10 }
 0x234   : > { %v4197_v29 = vpop.f32.mrb[16].mxu0  ;;  %4259 = vmatprep.mubr.msk.bf16.mxu1 %vm3097_vm8, %v2921_v47 }
 0x235   : > { %v4297_v41 = vadd.f32 %v4197_v29, %v5804_v9  ;;  %v2820_v45 = vpop.f32.mrb[17].mxu0  ;;  %4260 = vmatmul.mubr.msk.bf16.gmra.mrb[44].mxu1 %vm3097_vm8, %v2922_v8 }
 0x236   : > { %v4298_v36 = vadd.f32 %v2820_v45, %v5806_v39  ;;  %v4198_v58 = vpop.f32.mrb[18].mxu0 }
 0x237   : > { %v4299_v6 = vadd.f32 %v4198_v58, %v5808_v31  ;;  %v2823_v37 = vpop.f32.mrb[19].mxu0 }
 0x238   : > { %v4300_v40 = vadd.f32 %v2823_v37, %v5810_v20 }
 0x239   : > { %v2924_v42 = vpack.c.bf16 %v4299_v6, %v4297_v41 }
 0x23a   : > { %v2923_v48 = vpack.c.bf16 %v4300_v40, %v4298_v36 }
 0x23c   : > { %v4201_v55 = vpop.f32.mrb[20].mxu0  ;;  %4263 = vmatprep.mubr.msk.bf16.mxu1 %vm3097_vm8, %v2923_v48 }
 0x23d   : > { %v4301_v30 = vadd.f32 %v4201_v55, %v5812_v44  ;;  %v2836_v57 = vpop.f32.mrb[21].mxu0  ;;  %4264 = vmatmul.mubr.msk.bf16.gmra.mrb[48].mxu1 %vm3097_vm8, %v2924_v42 }
 0x23e   : > { %v4302_v9 = vadd.f32 %v2836_v57, %v5814_v35  ;;  %v4202_v2 = vpop.f32.mrb[22].mxu0 }
 0x23f   : > { %v4303_v39 = vadd.f32 %v4202_v2, %v5816_v33  ;;  %v2839_v61 = vpop.f32.mrb[23].mxu0 }
 0x240   : > { %v4304_v31 = vadd.f32 %v2839_v61, %v5818_v53 }
 0x241   : > { %v2926_v63 = vpack.c.bf16 %v4303_v39, %v4301_v30 }
 0x242   : > { %v2925_v20 = vpack.c.bf16 %v4304_v31, %v4302_v9 }
 0x244   : > { %v4205_v7 = vpop.f32.mrb[24].mxu0  ;;  %4267 = vmatprep.mubr.msk.bf16.mxu1 %vm3097_vm8, %v2925_v20 }
 0x245   : > { %v4305_v46 = vadd.f32 %v4205_v7, %v5820_v0  ;;  %v2852_v13 = vpop.f32.mrb[25].mxu0  ;;  %4268 = vmatmul.mubr.msk.bf16.gmra.mrb[52].mxu1 %vm3097_vm8, %v2926_v63 }
 0x246   : > { %v4306_v44 = vadd.f32 %v2852_v13, %v5822_v1  ;;  %v4206_v4 = vpop.f32.mrb[26].mxu0 }
 0x247   : > { %v4307_v35 = vadd.f32 %v4206_v4, %v5824_v43  ;;  %v2855_v51 = vpop.f32.mrb[27].mxu0 }
 0x248   : > { %v4308_v33 = vadd.f32 %v2855_v51, %v5826_v60 }
 0x249   : > { %v2928_v24 = vpack.c.bf16 %v4307_v35, %v4305_v46 }
 0x24a   : > { %v2927_v53 = vpack.c.bf16 %v4308_v33, %v4306_v44 }
 0x24c   : > { %v4209_v49 = vpop.f32.mrb[28].mxu0  ;;  %4271 = vmatprep.mubr.msk.bf16.mxu1 %vm3097_vm8, %v2927_v53 }
 0x24d   : > { %v4309_v0 = vadd.f32 %v4209_v49, %v5828_v22  ;;  %v2868_v52 = vpop.f32.mrb[29].mxu0  ;;  %4272 = vmatmul.mubr.msk.bf16.gmra.mrb[56].mxu1 %vm3097_vm8, %v2928_v24 }
 0x24e   : > { %v4310_v1 = vadd.f32 %v2868_v52, %v5830_v15  ;;  %v4210_v5 = vpop.f32.mrb[30].mxu0 }
 0x24f   : > { %v4311_v43 = vadd.f32 %v4210_v5, %v5832_v32  ;;  %v2871_v23 = vpop.f32.mrb[31].mxu0 }
 0x250   : > { %v4312_v60 = vadd.f32 %v2871_v23, %v5834_v26 }
 0x251   : > { %v2930_v16 = vpack.c.bf16 %v4311_v43, %v4309_v0 }
 0x252   : > { %v2929_v21 = vpack.c.bf16 %v4312_v60, %v4310_v1 }
 0x254   : > { %4275 = vmatprep.mubr.msk.bf16.mxu1 %vm3097_vm8, %v2929_v21 }
 0x255   : > { %4276 = vmatmul.mubr.msk.bf16.gmra.mrb[60].mxu1 %vm3097_vm8, %v2930_v16 }
 0x2f0   : > { %v4249_v22 = vpop.f32.mrb[32].mxu1 }
 0x2f1   : > { %v3312_v3 = vmax.f32 %v4249_v22, 0.0  ;;  %v3183_v12 = vpop.f32.mrb[33].mxu1 }
 0x2f2   : > { %v3310_v56 = vmax.f32 %v3183_v12, 0.0  ;;  %v4250_v15 = vpop.f32.mrb[34].mxu1 }
 0x2f3   : > { %3344 = vst [vmem:[%s5871_s13 + $0x10] sm:$0xff] %v3312_v3  ;;  %v3313_v32 = vmax.f32 %v4250_v15, 0.0  ;;  %v3186_v26 = vpop.f32.mrb[35].mxu1 }
 0x2f4   : > { %3342 = vst [vmem:[%s5871_s13] sm:$0xff] %v3310_v56  ;;  %v3311_v59 = vmax.f32 %v3186_v26, 0.0 }
 0x2f5   : > { %3345 = vst [vmem:[%s5871_s13 + $0x18] sm:$0xff] %v3313_v32 }
 0x2f6   : > { %3343 = vst [vmem:[%s5871_s13 + $0x8] sm:$0xff] %v3311_v59 }
 0x2f8   : > { %v4253_v27 = vpop.f32.mrb[36].mxu1 }
 0x2f9   : > { %v3316_v54 = vmax.f32 %v4253_v27, 0.0  ;;  %v3199_v18 = vpop.f32.mrb[37].mxu1 }
 0x2fa   : > { %v3314_v19 = vmax.f32 %v3199_v18, 0.0  ;;  %v4254_v14 = vpop.f32.mrb[38].mxu1 }
 0x2fb   : > { %3348 = vst [vmem:[%s5871_s13 + $0x30] sm:$0xff] %v3316_v54  ;;  %v3317_v17 = vmax.f32 %v4254_v14, 0.0  ;;  %v3202_v62 = vpop.f32.mrb[39].mxu1 }
 0x2fc   : > { %3346 = vst [vmem:[%s5871_s13 + $0x20] sm:$0xff] %v3314_v19  ;;  %v3315_v28 = vmax.f32 %v3202_v62, 0.0 }
 0x2fd   : > { %3349 = vst [vmem:[%s5871_s13 + $0x38] sm:$0xff] %v3317_v17 }
 0x2fe   : > { %3347 = vst [vmem:[%s5871_s13 + $0x28] sm:$0xff] %v3315_v28 }
 0x300   : > { %v4257_v25 = vpop.f32.mrb[40].mxu1 }
 0x301   : > { %v3320_v10 = vmax.f32 %v4257_v25, 0.0  ;;  %v3215_v11 = vpop.f32.mrb[41].mxu1 }
 0x302   : > { %v3318_v34 = vmax.f32 %v3215_v11, 0.0  ;;  %v4258_v50 = vpop.f32.mrb[42].mxu1 }
 0x303   : > { %3352 = vst [vmem:[%s5871_s13 + $0x50] sm:$0xff] %v3320_v10  ;;  %v3321_v38 = vmax.f32 %v4258_v50, 0.0  ;;  %v3218_v8 = vpop.f32.mrb[43].mxu1 }
 0x304   : > { %3350 = vst [vmem:[%s5871_s13 + $0x40] sm:$0xff] %v3318_v34  ;;  %v3319_v47 = vmax.f32 %v3218_v8, 0.0 }
 0x305   : > { %3353 = vst [vmem:[%s5871_s13 + $0x58] sm:$0xff] %v3321_v38 }
 0x306   : > { %3351 = vst [vmem:[%s5871_s13 + $0x48] sm:$0xff] %v3319_v47 }
 0x308   : > { %v4261_v29 = vpop.f32.mrb[44].mxu1 }
 0x309   : > { %v3324_v41 = vmax.f32 %v4261_v29, 0.0  ;;  %v3231_v45 = vpop.f32.mrb[45].mxu1 }
 0x30a   : > { %v3322_v36 = vmax.f32 %v3231_v45, 0.0  ;;  %v4262_v58 = vpop.f32.mrb[46].mxu1 }
 0x30b   : > { %3356 = vst [vmem:[%s5871_s13 + $0x70] sm:$0xff] %v3324_v41  ;;  %v3325_v6 = vmax.f32 %v4262_v58, 0.0  ;;  %v3234_v37 = vpop.f32.mrb[47].mxu1 }
 0x30c   : > { %3354 = vst [vmem:[%s5871_s13 + $0x60] sm:$0xff] %v3322_v36  ;;  %v3323_v40 = vmax.f32 %v3234_v37, 0.0 }
 0x30d   : > { %3357 = vst [vmem:[%s5871_s13 + $0x78] sm:$0xff] %v3325_v6 }
 0x30e   : > { %3355 = vst [vmem:[%s5871_s13 + $0x68] sm:$0xff] %v3323_v40 }
 0x310   : > { %v4265_v42 = vpop.f32.mrb[48].mxu1 }
 0x311   : > { %v3328_v48 = vmax.f32 %v4265_v42, 0.0  ;;  %v3247_v55 = vpop.f32.mrb[49].mxu1 }
 0x312   : > { %v3326_v30 = vmax.f32 %v3247_v55, 0.0  ;;  %v4266_v57 = vpop.f32.mrb[50].mxu1 }
 0x313   : > { %3360 = vst [vmem:[%s5871_s13 + $0x90] sm:$0xff] %v3328_v48  ;;  %v3329_v9 = vmax.f32 %v4266_v57, 0.0  ;;  %v3250_v2 = vpop.f32.mrb[51].mxu1 }
 0x314   : > { %3358 = vst [vmem:[%s5871_s13 + $0x80] sm:$0xff] %v3326_v30  ;;  %v3327_v39 = vmax.f32 %v3250_v2, 0.0 }
 0x315   : > { %3361 = vst [vmem:[%s5871_s13 + $0x98] sm:$0xff] %v3329_v9 }
 0x316   : > { %3359 = vst [vmem:[%s5871_s13 + $0x88] sm:$0xff] %v3327_v39 }
 0x318   : > { %v4269_v61 = vpop.f32.mrb[52].mxu1 }
 0x319   : > { %v3332_v31 = vmax.f32 %v4269_v61, 0.0  ;;  %v3263_v63 = vpop.f32.mrb[53].mxu1 }
 0x31a   : > { %v3330_v20 = vmax.f32 %v3263_v63, 0.0  ;;  %v4270_v7 = vpop.f32.mrb[54].mxu1 }
 0x31b   : > { %3364 = vst [vmem:[%s5871_s13 + $0xb0] sm:$0xff] %v3332_v31  ;;  %v3333_v46 = vmax.f32 %v4270_v7, 0.0  ;;  %v3266_v13 = vpop.f32.mrb[55].mxu1 }
 0x31c   : > { %3362 = vst [vmem:[%s5871_s13 + $0xa0] sm:$0xff] %v3330_v20  ;;  %v3331_v44 = vmax.f32 %v3266_v13, 0.0 }
 0x31d   : > { %3365 = vst [vmem:[%s5871_s13 + $0xb8] sm:$0xff] %v3333_v46 }
 0x31e   : > { %3363 = vst [vmem:[%s5871_s13 + $0xa8] sm:$0xff] %v3331_v44 }
 0x320   : > { %v4273_v4 = vpop.f32.mrb[56].mxu1 }
 0x321   : > { %v3336_v35 = vmax.f32 %v4273_v4, 0.0  ;;  %v3279_v51 = vpop.f32.mrb[57].mxu1 }
 0x322   : > { %v3334_v33 = vmax.f32 %v3279_v51, 0.0  ;;  %v4274_v24 = vpop.f32.mrb[58].mxu1 }
 0x323   : > { %3368 = vst [vmem:[%s5871_s13 + $0xd0] sm:$0xff] %v3336_v35  ;;  %v3337_v53 = vmax.f32 %v4274_v24, 0.0  ;;  %v3282_v49 = vpop.f32.mrb[59].mxu1 }
 0x324   : > { %3366 = vst [vmem:[%s5871_s13 + $0xc0] sm:$0xff] %v3334_v33  ;;  %v3335_v0 = vmax.f32 %v3282_v49, 0.0 }
 0x325   : > { %3369 = vst [vmem:[%s5871_s13 + $0xd8] sm:$0xff] %v3337_v53 }
 0x326   : > { %3367 = vst [vmem:[%s5871_s13 + $0xc8] sm:$0xff] %v3335_v0 }
 0x328   : > { %v4277_v52 = vpop.f32.mrb[60].mxu1 }
 0x329   : > { %v3340_v1 = vmax.f32 %v4277_v52, 0.0  ;;  %v3295_v5 = vpop.f32.mrb[61].mxu1 }
 0x32a   : > { %v3338_v43 = vmax.f32 %v3295_v5, 0.0  ;;  %v4278_v23 = vpop.f32.mrb[62].mxu1 }
 0x32b   : > { %3372 = vst [vmem:[%s5871_s13 + $0xf0] sm:$0xff] %v3340_v1  ;;  %v3341_v60 = vmax.f32 %v4278_v23, 0.0  ;;  %v3298_v16 = vpop.f32.mrb[63].mxu1 }
 0x32c   : > { %3370 = vst [vmem:[%s5871_s13 + $0xe0] sm:$0xff] %v3338_v43  ;;  %v3339_v21 = vmax.f32 %v3298_v16, 0.0 }
 0x32d   : > { %3373 = vst [vmem:[%s5871_s13 + $0xf8] sm:$0xff] %v3341_v60 }
 0x32e   : > { %3371 = vst [vmem:[%s5871_s13 + $0xe8] sm:$0xff] %v3339_v21 }
 0x32f   : > { %4647 = shalt.err (!%p4644_p3)
}
 0x330   : > { %s4648_s6 = scalar_lea.hbm %s5907_s27, 4096  ;;  %s4652_s9 = scalar_lea.hbm %s5961_s4, 8192 }
 0x331   : > { %p4649_p4 = scmp.ne.s32.totalorder %s5907_s27, %s4648_s6  ;;  %p4653_p9 = scmp.lt.u32.totalorder %s5907_s27, %s5961_s4 }
 0x332   : > { %p4654_p10 = scmp.lt.u32.totalorder %s4652_s9, %s4648_s6  ;;  %p4656_p12 = scmp.lt.u32.totalorder %s4648_s6, %s5907_s27 }
 0x333   : > { %p4650_p7 = pnand %p4649_p4, %p4765_p5 }
 0x334   : > { %p4655_p11 = por %p4654_p10, %p4653_p9 }
 0x335   : > { %p4651_p8 = pneg %p4650_p7 }
 0x336   : > { %p4657_p13 = por %p4656_p12, %p4655_p11 }
 0x338   : > { %p4658_p0 = pnand %p4657_p13, %p4651_p8 }
 0x33a   : > { %4661 = shalt.err (!%p4658_p0)
}
 0x33b   : > { %s4700_s12 = smov 128   ;;  %s4701_s13 = smov 8  }
 0x33c   : > { %4571 = dma.vmem_to_hbm [thread:$0]  (%p4765_p5), %s5909_s20, 4096, %s5907_s27, %s5916_s19, %s4700_s12, %s4700_s12, %s4701_s13  }
 0x33d PF: > { %p4577_p1 = scmp.ge.s32.totalorder %s4696_s18, 2  ;;  %s3403_s14 = sand.u32 1, %s4684_s15  }
 0x33e   : > { %s3404_s22 = scalar_lea.sflag [#allocation3], %s3403_s14 }
 0x33f   : > { %p4574_p2 = pnand %p4577_p1, %p4769_p6 }
 0x341   : > { %4679 = dma.done.wait (!%p4574_p2), %s3404_s22, 4096  }
 0x342   : > { %4681 = vsyncadd (!%p4574_p2), %s3404_s22, 4294963200  ;;  %p14_p3 = scmp.ge.s32.totalorder %s4752_s21, 4   ;;  %s6111_s15 = smov %s4688_s16 }
 0x343   : > { %s6112_s16 = smov %s4692_s17  ;;  %s6113_s17 = smov %s4763_s24 }
 0x344   : > { %s6114_s18 = smov %s4752_s21  ;;  %16 = sbr.rel (!%p14_p3) target bundleno = 3 (0x3), region = 79 }
 0x34b   :  { %3409 = vsyncpa [#allocation3], 1 }
 0x34c   :  { %3411 = vsyncpa [#allocation3 + $0x1], 1 }

</bundles_post_ra>
